<compile_context>
chip_gen: v7x
topology: tpu7x:2x2x1
jax: 0.10.0
libtpu: 0.0.40
codegen_flags: <defaults>
</compile_context>

<pallas_src>
import jax
import jax.numpy as jnp
import numpy as np
from jax.experimental import pallas as pl
from jax.experimental.pallas import tpu as pltpu

# ---- small synthetic config (module ctor args: n_embed / n_layer / vocab) ---
B = 2            # batch of texts
S = 16           # max_seq_len stand-in (real: 77)
D = 128          # n_embed -> lane-dense activations (multiple of 128)
H = 4            # attention heads
DH = D // H      # 32
FF = 4 * D       # x-transformers FeedForward mult=4
N_LAYERS = 2     # n_layer
VOCAB = 1000     # tag vocab stand-in
EPS = 1e-5
BS = B * S
HBS = H * BS     # packed-heads lane extent (128 here -> lane-dense softmax)

WDTYPE = jnp.bfloat16    # frozen-weight dtype fed to the MXU


def _layernorm(x, w, b):
    mu = jnp.mean(x, axis=-1, keepdims=True)
    var = jnp.mean((x - mu) ** 2, axis=-1, keepdims=True)
    return (x - mu) * jax.lax.rsqrt(var + EPS) * w + b


def _gelu(u):
    # tanh-approx GELU (erf has no guaranteed Mosaic lowering); used in both
    # the kernel and the pure-JAX reference so they match.
    c = 0.7978845608028654  # sqrt(2/pi)
    return 0.5 * u * (1.0 + jnp.tanh(c * (u + 0.044715 * u * u * u)))


# ---------------------------------------------------------------------------
# layer-invariant attention constants (built once on the host, loaded once)
# ---------------------------------------------------------------------------
def _build_attn_consts():
    seq = np.arange(BS) // S
    same = seq[:, None] == seq[None, :]                       # (BS, BS)
    bias = np.where(same, 0.0, -1e30).astype(np.float32)
    attn_bias = np.tile(bias, (1, H))                         # (BS, H*BS) additive bias
    row_head = np.arange(HBS) // BS                           # head of packed row
    col_head = np.arange(D) // DH                             # head of feature column
    head_mask = (row_head[:, None] == col_head[None, :]).astype(np.float32)   # (H*BS, D)
    seg_bcast = (row_head[:, None] == row_head[None, :]).astype(np.float32)   # (H*BS, H*BS)
    return (jnp.asarray(attn_bias), jnp.asarray(head_mask), jnp.asarray(seg_bcast))


# ---------------------------------------------------------------------------
# fused kernel: all encoder blocks + final LayerNorm, one grid step per layer
# ---------------------------------------------------------------------------
def encoder_kernel(x_emb_hbm, attn_bias, head_mask, seg_bcast,
                   ln1w, ln1b, wqkv, wo, bo, ln2w, ln2b,
                   w1, b1, w2, b2, lnfw, lnfb, o_ref):
    layer = pl.program_id(0)
    last = pl.num_programs(0) - 1

    # layer 0: seed the VMEM-resident carry (the output block) straight from
    # HBM; the embeddings never occupy their own resident VMEM input block.
    @pl.when(layer == 0)
    def _():
        pltpu.sync_copy(x_emb_hbm, o_ref)

    x = o_ref[...]                                            # (BS, D) f32 carry

    # ---- pre-LN multi-head self-attention (bidirectional Encoder) ----
    h = _layernorm(x, ln1w[0], ln1b[0])
    qkv = jnp.dot(h.astype(WDTYPE), wqkv[0],
                  preferred_element_type=jnp.float32)         # (BS, 3D), no bias
    q = qkv[:, :D]                       # 1/sqrt(DH) already folded into Wq
    k = qkv[:, D:2 * D]
    v = qkv[:, 2 * D:3 * D]

    # pack heads block-diagonally along the sublane axis (head_mask is const):
    # row h*BS+j of kpack/vpack holds k/v row j restricted to head h's columns.
    mask = head_mask[...]
    kpack = (jnp.concatenate([k] * H, axis=0) * mask).astype(WDTYPE)   # (H*BS, D)
    vpack = (jnp.concatenate([v] * H, axis=0) * mask).astype(WDTYPE)   # (H*BS, D)

    # scores for all heads in one lane-dense (BS, H*BS) slab
    s = jax.lax.dot_general(q.astype(WDTYPE), kpack, (((1,), (1,)), ((), ())),
                            preferred_element_type=jnp.float32)        # (BS, H*BS)
    s = s + attn_bias[...]                               # same-sequence additive mask
    s = s - jnp.max(s, axis=-1, keepdims=True)           # per-row shift (segment-invariant)
    p = jnp.exp(s)
    # per-head softmax denominator, broadcast back over each head's BS columns
    denom = jnp.dot(p, seg_bcast[...], preferred_element_type=jnp.float32)
    p = p * pl.reciprocal(denom, approx=True)
    # block-diagonal V packing => ctx already has heads concatenated along D
    ctx = jnp.dot(p.astype(WDTYPE), vpack, preferred_element_type=jnp.float32)  # (BS, D)
    attn = jnp.dot(ctx.astype(WDTYPE), wo[0],
                   preferred_element_type=jnp.float32) + bo[0]
    x = x + attn

    # ---- pre-LN FeedForward: Linear -> GELU -> Linear ----
    h2 = _layernorm(x, ln2w[0], ln2b[0])
    u = jnp.dot(h2.astype(WDTYPE), w1[0],
                preferred_element_type=jnp.float32) + b1[0]
    u = _gelu(u)
    x = x + jnp.dot(u.astype(WDTYPE), w2[0],
                    preferred_element_type=jnp.float32) + b2[0]

    @pl.when(layer != last)
    def _():
        o_ref[...] = x

    @pl.when(layer == last)     # TransformerWrapper's final LayerNorm, fused
    def _():
        o_ref[...] = _layernorm(x, lnfw[...], lnfb[...])


# ---------------------------------------------------------------------------
# wrapper: embedding glue + single fused pallas_call
# ---------------------------------------------------------------------------
def wrapped_transformer_embed(tokens, params):
    # glue: token-embedding gather + absolute positional embedding (XLA ops)
    x = params['tok_emb'][tokens] + params['pos_emb'][None]        # (B, S, D)
    x_emb = x.reshape(BS, D).astype(jnp.float32)

    attn_bias, head_mask, seg_bcast = _build_attn_consts()

    layer3 = lambda r, c: pl.BlockSpec((1, r, c), lambda l: (l, 0, 0))
    const2 = lambda r, c: pl.BlockSpec((r, c), lambda l: (0, 0))

    z = pl.pallas_call(
        encoder_kernel,
        out_shape=jax.ShapeDtypeStruct((BS, D), jnp.float32),
        grid=(N_LAYERS,),
        in_specs=[
            pl.BlockSpec(memory_space=pl.ANY),     # embeddings: stay in HBM, DMA'd once
            const2(BS, HBS),                       # additive same-seq bias (loaded once)
            const2(HBS, D),                        # head block-diag mask for K/V packing
            const2(HBS, HBS),                      # per-head denominator broadcast matrix
            layer3(1, D), layer3(1, D),            # ln1 scale / bias
            layer3(D, 3 * D),                      # fused Wq|Wk|Wv (bf16, Q pre-scaled)
            layer3(D, D), layer3(1, D),            # Wo (bf16), bo
            layer3(1, D), layer3(1, D),            # ln2 scale / bias
            layer3(D, FF), layer3(1, FF),          # W1 (bf16), b1
            layer3(FF, D), layer3(1, D),           # W2 (bf16), b2
            const2(1, D), const2(1, D),            # final LayerNorm scale / bias
        ],
        out_specs=pl.BlockSpec((BS, D), lambda l: (0, 0)),
        compiler_params=pltpu.CompilerParams(
            dimension_semantics=("arbitrary",),    # sequential layer carry
            # budget: ~2x one layer's bf16 weights + constants + (BS,FF) f32
            # intermediates; re-derive for real shapes on v7x (64 MiB physical).
            vmem_limit_bytes=32 * 1024 * 1024),
    )(x_emb, attn_bias, head_mask, seg_bcast,
      params['ln1_w'], params['ln1_b'], params['wqkv'],
      params['wo'], params['bo'], params['ln2_w'], params['ln2_b'],
      params['w1'], params['b1'], params['w2'], params['b2'],
      params['lnf_w'], params['lnf_b'])
    return z.reshape(B, S, D)


# ---------------------------------------------------------------------------
# deterministic synthetic parameters (frozen weights -> bf16)
# ---------------------------------------------------------------------------
def init_params(key):
    ks = jax.random.split(key, 15)
    n = lambda k, shape, std: std * jax.random.normal(k, shape, dtype=jnp.float32)
    wqkv = n(ks[4], (N_LAYERS, D, 3 * D), 0.05)
    wqkv = wqkv.at[:, :, :D].multiply(DH ** -0.5)   # fold attention scale into Wq
    return {
        'tok_emb': n(ks[0], (VOCAB, D), 0.02),
        'pos_emb': n(ks[1], (S, D), 0.02),
        'ln1_w': 1.0 + n(ks[2], (N_LAYERS, 1, D), 0.05),
        'ln1_b': n(ks[3], (N_LAYERS, 1, D), 0.02),
        'wqkv': wqkv.astype(WDTYPE),
        'wo': n(ks[5], (N_LAYERS, D, D), 0.05).astype(WDTYPE),
        'bo': n(ks[6], (N_LAYERS, 1, D), 0.02),
        'ln2_w': 1.0 + n(ks[7], (N_LAYERS, 1, D), 0.05),
        'ln2_b': n(ks[8], (N_LAYERS, 1, D), 0.02),
        'w1': n(ks[9], (N_LAYERS, D, FF), 0.05).astype(WDTYPE),
        'b1': n(ks[10], (N_LAYERS, 1, FF), 0.02),
        'w2': n(ks[11], (N_LAYERS, FF, D), 0.05).astype(WDTYPE),
        'b2': n(ks[12], (N_LAYERS, 1, D), 0.02),
        'lnf_w': 1.0 + n(ks[13], (1, D), 0.05),
        'lnf_b': n(ks[14], (1, D), 0.02),
    }


# ---------------------------------------------------------------------------
# pure-JAX reference (same mixed-precision math) for a correctness check
# ---------------------------------------------------------------------------
def ref_forward(tokens, params):
    def ln(x, w, b):
        mu = x.mean(-1, keepdims=True)
        var = ((x - mu) ** 2).mean(-1, keepdims=True)
        return (x - mu) * jax.lax.rsqrt(var + EPS) * w + b

    def mm(a, w):   # bf16 operands, f32 accumulation, mirroring the kernel
        return jnp.einsum('bsd,de->bse', a.astype(WDTYPE), w,
                          preferred_element_type=jnp.float32)

    x = params['tok_emb'][tokens] + params['pos_emb'][None]
    x = x.astype(jnp.float32)
    for l in range(N_LAYERS):
        h = ln(x, params['ln1_w'][l], params['ln1_b'][l])
        qkv = mm(h, params['wqkv'][l]).astype(WDTYPE)          # (B, S, 3D)
        q, k, v = jnp.split(qkv, 3, axis=-1)
        qh = q.reshape(B, S, H, DH)
        kh = k.reshape(B, S, H, DH)
        vh = v.reshape(B, S, H, DH)
        # attention scale already folded into the Q projection weights
        s = jnp.einsum('bqhd,bkhd->bhqk', qh, kh,
                       preferred_element_type=jnp.float32)
        p = jax.nn.softmax(s, axis=-1)
        ctx = jnp.einsum('bhqk,bkhd->bqhd', p.astype(WDTYPE), vh,
                         preferred_element_type=jnp.float32).reshape(B, S, D)
        x = x + mm(ctx, params['wo'][l]) + params['bo'][l]
        h2 = ln(x, params['ln2_w'][l], params['ln2_b'][l])
        u = _gelu(mm(h2, params['w1'][l]) + params['b1'][l])
        x = x + mm(u, params['w2'][l]) + params['b2'][l]
    return ln(x, params['lnf_w'], params['lnf_b'])


if __name__ == "__main__":
    key = jax.random.PRNGKey(0)
    kp, kt = jax.random.split(key)
    params = init_params(kp)

    # synthetic "TagTokenizer" output: random tag ids, PAD-filled to max_length,
    # then clamped like the module's forward() does.
    PAD_ID = VOCAB - 1
    ids = np.array(jax.random.randint(kt, (B, S), 0, VOCAB), dtype=np.int32)
    for b, length in enumerate((9, 13)):
        ids[b, length:] = PAD_ID
    tokens = jnp.asarray(np.clip(ids, 0, PAD_ID), dtype=jnp.int32)

    z = jax.block_until_ready(wrapped_transformer_embed(tokens, params))
    z_ref = jax.block_until_ready(ref_forward(tokens, params))

    assert z.shape == (B, S, D) and z.dtype == jnp.float32
    np.testing.assert_allclose(np.asarray(z), np.asarray(z_ref),
                               rtol=2e-2, atol=2e-2)
    print("KERNEL_OK")
</pallas_src>

<mosaic_0001>
module attributes {stable_mosaic.version = 11 : i64} {
  func.func @encoder_kernel(%arg0: i32, %arg1: memref<32x128xf32, #tpu.memory_space<any>>, %arg2: memref<32x128xf32, #tpu.memory_space<vmem>>, %arg3: memref<128x128xf32, #tpu.memory_space<vmem>>, %arg4: memref<128x128xf32, #tpu.memory_space<vmem>>, %arg5: memref<1x1x128xf32, #tpu.memory_space<vmem>>, %arg6: memref<1x1x128xf32, #tpu.memory_space<vmem>>, %arg7: memref<1x128x384xbf16, #tpu.memory_space<vmem>>, %arg8: memref<1x128x128xbf16, #tpu.memory_space<vmem>>, %arg9: memref<1x1x128xf32, #tpu.memory_space<vmem>>, %arg10: memref<1x1x128xf32, #tpu.memory_space<vmem>>, %arg11: memref<1x1x128xf32, #tpu.memory_space<vmem>>, %arg12: memref<1x128x512xbf16, #tpu.memory_space<vmem>>, %arg13: memref<1x1x512xf32, #tpu.memory_space<vmem>>, %arg14: memref<1x512x128xbf16, #tpu.memory_space<vmem>>, %arg15: memref<1x1x128xf32, #tpu.memory_space<vmem>>, %arg16: memref<1x128xf32, #tpu.memory_space<vmem>>, %arg17: memref<1x128xf32, #tpu.memory_space<vmem>>, %arg18: memref<32x128xf32, #tpu.memory_space<vmem>>) attributes {dimension_semantics = [#tpu.dimension_semantics<arbitrary>], iteration_bounds = array<i64: 2>, scalar_prefetch = 0 : i64, scratch_operands = 0 : i64, tpu.core_type = #tpu.core_type<tc>, window_params = [{}, {pipeline_mode = #tpu.pipeline_mode<synchronous>, transform_indices = @transform_1, window_bounds = array<i64: 32, 128>}, {pipeline_mode = #tpu.pipeline_mode<synchronous>, transform_indices = @transform_2, window_bounds = array<i64: 128, 128>}, {pipeline_mode = #tpu.pipeline_mode<synchronous>, transform_indices = @transform_3, window_bounds = array<i64: 128, 128>}, {transform_indices = @transform_4, window_bounds = array<i64: 1, 1, 128>}, {transform_indices = @transform_5, window_bounds = array<i64: 1, 1, 128>}, {transform_indices = @transform_6, window_bounds = array<i64: 1, 128, 384>}, {transform_indices = @transform_7, window_bounds = array<i64: 1, 128, 128>}, {transform_indices = @transform_8, window_bounds = array<i64: 1, 1, 128>}, {transform_indices = @transform_9, window_bounds = array<i64: 1, 1, 128>}, {transform_indices = @transform_10, window_bounds = array<i64: 1, 1, 128>}, {transform_indices = @transform_11, window_bounds = array<i64: 1, 128, 512>}, {transform_indices = @transform_12, window_bounds = array<i64: 1, 1, 512>}, {transform_indices = @transform_13, window_bounds = array<i64: 1, 512, 128>}, {transform_indices = @transform_14, window_bounds = array<i64: 1, 1, 128>}, {pipeline_mode = #tpu.pipeline_mode<synchronous>, transform_indices = @transform_15, window_bounds = array<i64: 1, 128>}, {pipeline_mode = #tpu.pipeline_mode<synchronous>, transform_indices = @transform_16, window_bounds = array<i64: 1, 128>}, {pipeline_mode = #tpu.pipeline_mode<synchronous>, transform_indices = @transform_17, window_bounds = array<i64: 32, 128>}]} {
    %c0_i32 = arith.constant 0 : i32
    %0 = arith.cmpi eq, %arg0, %c0_i32 : i32
    %1 = arith.extui %0 : i1 to i32
    %c0_i32_0 = arith.constant 0 : i32
    %2 = arith.cmpi ne, %1, %c0_i32_0 : i32
    scf.if %2 {
      "tpu.region"() ({
        %130 = tpu.sem_alloc : memref<!tpu.dma_semaphore, #tpu.memory_space<semaphore_mem>>
        tpu.enqueue_dma source(%arg1 : memref<32x128xf32, #tpu.memory_space<any>>) target(%arg18 : memref<32x128xf32, #tpu.memory_space<vmem>>) target_semaphore(%130 : memref<!tpu.dma_semaphore, #tpu.memory_space<semaphore_mem>>)
        tpu.wait_dma2 semaphore(%130 : memref<!tpu.dma_semaphore, #tpu.memory_space<semaphore_mem>>) src(%arg1 : memref<32x128xf32, #tpu.memory_space<any>>) dst(%arg18 : memref<32x128xf32, #tpu.memory_space<vmem>>)
        tpu.yield
      }) : () -> ()
    } else {
    }
    %c0 = arith.constant 0 : index
    %c0_1 = arith.constant 0 : index
    %3 = vector.load %arg18[%c0, %c0_1] : memref<32x128xf32, #tpu.memory_space<vmem>>, vector<32x128xf32>
    %c0_2 = arith.constant 0 : index
    %c0_3 = arith.constant 0 : index
    %c0_4 = arith.constant 0 : index
    %4 = vector.load %arg5[%c0_2, %c0_3, %c0_4] : memref<1x1x128xf32, #tpu.memory_space<vmem>>, vector<1x1x128xf32>
    %5 = vector.shape_cast %4 : vector<1x1x128xf32> to vector<1x128xf32>
    %c0_5 = arith.constant 0 : index
    %c0_6 = arith.constant 0 : index
    %c0_7 = arith.constant 0 : index
    %6 = vector.load %arg6[%c0_5, %c0_6, %c0_7] : memref<1x1x128xf32, #tpu.memory_space<vmem>>, vector<1x1x128xf32>
    %7 = vector.shape_cast %6 : vector<1x1x128xf32> to vector<1x128xf32>
    %cst = arith.constant dense<0.000000e+00> : vector<32xf32>
    %8 = vector.multi_reduction <add>, %3, %cst [1] : vector<32x128xf32> to vector<32xf32>
    %9 = vector.shape_cast %8 : vector<32xf32> to vector<32x1xf32>
    %cst_8 = arith.constant 1.280000e+02 : f32
    %10 = vector.broadcast %cst_8 : f32 to vector<32x1xf32>
    %11 = arith.divf %9, %10 : vector<32x1xf32>
    %12 = vector.broadcast %11 : vector<32x1xf32> to vector<32x128xf32>
    %13 = arith.subf %3, %12 : vector<32x128xf32>
    %14 = arith.mulf %13, %13 : vector<32x128xf32>
    %cst_9 = arith.constant dense<0.000000e+00> : vector<32xf32>
    %15 = vector.multi_reduction <add>, %14, %cst_9 [1] : vector<32x128xf32> to vector<32xf32>
    %16 = vector.shape_cast %15 : vector<32xf32> to vector<32x1xf32>
    %cst_10 = arith.constant 1.280000e+02 : f32
    %17 = vector.broadcast %cst_10 : f32 to vector<32x1xf32>
    %18 = arith.divf %16, %17 : vector<32x1xf32>
    %19 = vector.broadcast %11 : vector<32x1xf32> to vector<32x128xf32>
    %20 = arith.subf %3, %19 : vector<32x128xf32>
    %cst_11 = arith.constant 9.99999974E-6 : f32
    %21 = vector.broadcast %cst_11 : f32 to vector<32x1xf32>
    %22 = arith.addf %18, %21 : vector<32x1xf32>
    %23 = math.rsqrt %22 : vector<32x1xf32>
    %24 = vector.broadcast %23 : vector<32x1xf32> to vector<32x128xf32>
    %25 = arith.mulf %20, %24 : vector<32x128xf32>
    %26 = vector.broadcast %5 : vector<1x128xf32> to vector<32x128xf32>
    %27 = arith.mulf %25, %26 : vector<32x128xf32>
    %28 = vector.broadcast %7 : vector<1x128xf32> to vector<32x128xf32>
    %29 = arith.addf %27, %28 : vector<32x128xf32>
    %30 = arith.truncf %29 : vector<32x128xf32> to vector<32x128xbf16>
    %c0_12 = arith.constant 0 : index
    %c0_13 = arith.constant 0 : index
    %c0_14 = arith.constant 0 : index
    %31 = vector.load %arg7[%c0_12, %c0_13, %c0_14] : memref<1x128x384xbf16, #tpu.memory_space<vmem>>, vector<1x128x384xbf16>
    %32 = vector.shape_cast %31 : vector<1x128x384xbf16> to vector<128x384xbf16>
    %cst_15 = arith.constant dense<0.000000e+00> : vector<32x384xf32>
    %33 = tpu.matmul %30, %32, %cst_15 {dimension_numbers = #tpu.dot_dimension_numbers<[1], [0], [0], [1], [0, 0, 1, 1], [], []>} : vector<32x128xbf16>, vector<128x384xbf16>, vector<32x384xf32> -> vector<32x384xf32>
    %34 = vector.extract_strided_slice %33 {offsets = [0, 0], sizes = [32, 128], strides = [1, 1]} : vector<32x384xf32> to vector<32x128xf32>
    %35 = vector.extract_strided_slice %33 {offsets = [0, 128], sizes = [32, 128], strides = [1, 1]} : vector<32x384xf32> to vector<32x128xf32>
    %36 = vector.extract_strided_slice %33 {offsets = [0, 256], sizes = [32, 128], strides = [1, 1]} : vector<32x384xf32> to vector<32x128xf32>
    %c0_16 = arith.constant 0 : index
    %c0_17 = arith.constant 0 : index
    %37 = vector.load %arg3[%c0_16, %c0_17] : memref<128x128xf32, #tpu.memory_space<vmem>>, vector<128x128xf32>
    %38 = tpu.concatenate %35, %35, %35, %35 in 0 : vector<32x128xf32>, vector<32x128xf32>, vector<32x128xf32>, vector<32x128xf32> -> vector<128x128xf32>
    %39 = arith.mulf %38, %37 : vector<128x128xf32>
    %40 = arith.truncf %39 : vector<128x128xf32> to vector<128x128xbf16>
    %41 = tpu.concatenate %36, %36, %36, %36 in 0 : vector<32x128xf32>, vector<32x128xf32>, vector<32x128xf32>, vector<32x128xf32> -> vector<128x128xf32>
    %42 = arith.mulf %41, %37 : vector<128x128xf32>
    %43 = arith.truncf %42 : vector<128x128xf32> to vector<128x128xbf16>
    %44 = arith.truncf %34 : vector<32x128xf32> to vector<32x128xbf16>
    %cst_18 = arith.constant dense<0.000000e+00> : vector<32x128xf32>
    %45 = tpu.matmul %44, %40, %cst_18 {dimension_numbers = #tpu.dot_dimension_numbers<[1], [1], [0], [0], [0, 0, 1, 0], [], []>} : vector<32x128xbf16>, vector<128x128xbf16>, vector<32x128xf32> -> vector<32x128xf32>
    %c0_19 = arith.constant 0 : index
    %c0_20 = arith.constant 0 : index
    %46 = vector.load %arg2[%c0_19, %c0_20] : memref<32x128xf32, #tpu.memory_space<vmem>>, vector<32x128xf32>
    %47 = arith.addf %45, %46 : vector<32x128xf32>
    %cst_21 = arith.constant dense<0xFF800000> : vector<32xf32>
    %48 = vector.multi_reduction <maximumf>, %47, %cst_21 [1] : vector<32x128xf32> to vector<32xf32>
    %49 = vector.shape_cast %48 : vector<32xf32> to vector<32x1xf32>
    %50 = vector.broadcast %49 : vector<32x1xf32> to vector<32x128xf32>
    %51 = arith.subf %47, %50 : vector<32x128xf32>
    %52 = math.exp %51 : vector<32x128xf32>
    %c0_22 = arith.constant 0 : index
    %c0_23 = arith.constant 0 : index
    %53 = vector.load %arg4[%c0_22, %c0_23] : memref<128x128xf32, #tpu.memory_space<vmem>>, vector<128x128xf32>
    %cst_24 = arith.constant dense<0.000000e+00> : vector<32x128xf32>
    %54 = tpu.matmul %52, %53, %cst_24 {dimension_numbers = #tpu.dot_dimension_numbers<[1], [0], [0], [1], [0, 0, 1, 1], [], []>} : vector<32x128xf32>, vector<128x128xf32>, vector<32x128xf32> -> vector<32x128xf32>
    %55 = tpu.reciprocal %54 {approx = true} : vector<32x128xf32> -> vector<32x128xf32>
    %56 = arith.mulf %52, %55 : vector<32x128xf32>
    %57 = arith.truncf %56 : vector<32x128xf32> to vector<32x128xbf16>
    %cst_25 = arith.constant dense<0.000000e+00> : vector<32x128xf32>
    %58 = tpu.matmul %57, %43, %cst_25 {dimension_numbers = #tpu.dot_dimension_numbers<[1], [0], [0], [1], [0, 0, 1, 1], [], []>} : vector<32x128xbf16>, vector<128x128xbf16>, vector<32x128xf32> -> vector<32x128xf32>
    %59 = arith.truncf %58 : vector<32x128xf32> to vector<32x128xbf16>
    %c0_26 = arith.constant 0 : index
    %c0_27 = arith.constant 0 : index
    %c0_28 = arith.constant 0 : index
    %60 = vector.load %arg8[%c0_26, %c0_27, %c0_28] : memref<1x128x128xbf16, #tpu.memory_space<vmem>>, vector<1x128x128xbf16>
    %61 = vector.shape_cast %60 : vector<1x128x128xbf16> to vector<128x128xbf16>
    %cst_29 = arith.constant dense<0.000000e+00> : vector<32x128xf32>
    %62 = tpu.matmul %59, %61, %cst_29 {dimension_numbers = #tpu.dot_dimension_numbers<[1], [0], [0], [1], [0, 0, 1, 1], [], []>} : vector<32x128xbf16>, vector<128x128xbf16>, vector<32x128xf32> -> vector<32x128xf32>
    %c0_30 = arith.constant 0 : index
    %c0_31 = arith.constant 0 : index
    %c0_32 = arith.constant 0 : index
    %63 = vector.load %arg9[%c0_30, %c0_31, %c0_32] : memref<1x1x128xf32, #tpu.memory_space<vmem>>, vector<1x1x128xf32>
    %64 = vector.shape_cast %63 : vector<1x1x128xf32> to vector<1x128xf32>
    %65 = vector.broadcast %64 : vector<1x128xf32> to vector<32x128xf32>
    %66 = arith.addf %62, %65 : vector<32x128xf32>
    %67 = arith.addf %3, %66 : vector<32x128xf32>
    %c0_33 = arith.constant 0 : index
    %c0_34 = arith.constant 0 : index
    %c0_35 = arith.constant 0 : index
    %68 = vector.load %arg10[%c0_33, %c0_34, %c0_35] : memref<1x1x128xf32, #tpu.memory_space<vmem>>, vector<1x1x128xf32>
    %69 = vector.shape_cast %68 : vector<1x1x128xf32> to vector<1x128xf32>
    %c0_36 = arith.constant 0 : index
    %c0_37 = arith.constant 0 : index
    %c0_38 = arith.constant 0 : index
    %70 = vector.load %arg11[%c0_36, %c0_37, %c0_38] : memref<1x1x128xf32, #tpu.memory_space<vmem>>, vector<1x1x128xf32>
    %71 = vector.shape_cast %70 : vector<1x1x128xf32> to vector<1x128xf32>
    %cst_39 = arith.constant dense<0.000000e+00> : vector<32xf32>
    %72 = vector.multi_reduction <add>, %67, %cst_39 [1] : vector<32x128xf32> to vector<32xf32>
    %73 = vector.shape_cast %72 : vector<32xf32> to vector<32x1xf32>
    %cst_40 = arith.constant 1.280000e+02 : f32
    %74 = vector.broadcast %cst_40 : f32 to vector<32x1xf32>
    %75 = arith.divf %73, %74 : vector<32x1xf32>
    %76 = vector.broadcast %75 : vector<32x1xf32> to vector<32x128xf32>
    %77 = arith.subf %67, %76 : vector<32x128xf32>
    %78 = arith.mulf %77, %77 : vector<32x128xf32>
    %cst_41 = arith.constant dense<0.000000e+00> : vector<32xf32>
    %79 = vector.multi_reduction <add>, %78, %cst_41 [1] : vector<32x128xf32> to vector<32xf32>
    %80 = vector.shape_cast %79 : vector<32xf32> to vector<32x1xf32>
    %cst_42 = arith.constant 1.280000e+02 : f32
    %81 = vector.broadcast %cst_42 : f32 to vector<32x1xf32>
    %82 = arith.divf %80, %81 : vector<32x1xf32>
    %83 = vector.broadcast %75 : vector<32x1xf32> to vector<32x128xf32>
    %84 = arith.subf %67, %83 : vector<32x128xf32>
    %cst_43 = arith.constant 9.99999974E-6 : f32
    %85 = vector.broadcast %cst_43 : f32 to vector<32x1xf32>
    %86 = arith.addf %82, %85 : vector<32x1xf32>
    %87 = math.rsqrt %86 : vector<32x1xf32>
    %88 = vector.broadcast %87 : vector<32x1xf32> to vector<32x128xf32>
    %89 = arith.mulf %84, %88 : vector<32x128xf32>
    %90 = vector.broadcast %69 : vector<1x128xf32> to vector<32x128xf32>
    %91 = arith.mulf %89, %90 : vector<32x128xf32>
    %92 = vector.broadcast %71 : vector<1x128xf32> to vector<32x128xf32>
    %93 = arith.addf %91, %92 : vector<32x128xf32>
    %94 = arith.truncf %93 : vector<32x128xf32> to vector<32x128xbf16>
    %c0_44 = arith.constant 0 : index
    %c0_45 = arith.constant 0 : index
    %c0_46 = arith.constant 0 : index
    %95 = vector.load %arg12[%c0_44, %c0_45, %c0_46] : memref<1x128x512xbf16, #tpu.memory_space<vmem>>, vector<1x128x512xbf16>
    %96 = vector.shape_cast %95 : vector<1x128x512xbf16> to vector<128x512xbf16>
    %cst_47 = arith.constant dense<0.000000e+00> : vector<32x512xf32>
    %97 = tpu.matmul %94, %96, %cst_47 {dimension_numbers = #tpu.dot_dimension_numbers<[1], [0], [0], [1], [0, 0, 1, 1], [], []>} : vector<32x128xbf16>, vector<128x512xbf16>, vector<32x512xf32> -> vector<32x512xf32>
    %c0_48 = arith.constant 0 : index
    %c0_49 = arith.constant 0 : index
    %c0_50 = arith.constant 0 : index
    %98 = vector.load %arg13[%c0_48, %c0_49, %c0_50] : memref<1x1x512xf32, #tpu.memory_space<vmem>>, vector<1x1x512xf32>
    %99 = vector.shape_cast %98 : vector<1x1x512xf32> to vector<1x512xf32>
    %100 = vector.broadcast %99 : vector<1x512xf32> to vector<32x512xf32>
    %101 = arith.addf %97, %100 : vector<32x512xf32>
    %cst_51 = arith.constant 5.000000e-01 : f32
    %102 = vector.broadcast %cst_51 : f32 to vector<32x512xf32>
    %103 = arith.mulf %102, %101 : vector<32x512xf32>
    %cst_52 = arith.constant 4.471500e-02 : f32
    %104 = vector.broadcast %cst_52 : f32 to vector<32x512xf32>
    %105 = arith.mulf %104, %101 : vector<32x512xf32>
    %106 = arith.mulf %105, %101 : vector<32x512xf32>
    %107 = arith.mulf %106, %101 : vector<32x512xf32>
    %108 = arith.addf %101, %107 : vector<32x512xf32>
    %cst_53 = arith.constant 0.797884583 : f32
    %109 = vector.broadcast %cst_53 : f32 to vector<32x512xf32>
    %110 = arith.mulf %109, %108 : vector<32x512xf32>
    %111 = math.tanh %110 : vector<32x512xf32>
    %cst_54 = arith.constant 1.000000e+00 : f32
    %112 = vector.broadcast %cst_54 : f32 to vector<32x512xf32>
    %113 = arith.addf %112, %111 : vector<32x512xf32>
    %114 = arith.mulf %103, %113 : vector<32x512xf32>
    %115 = arith.truncf %114 : vector<32x512xf32> to vector<32x512xbf16>
    %c0_55 = arith.constant 0 : index
    %c0_56 = arith.constant 0 : index
    %c0_57 = arith.constant 0 : index
    %116 = vector.load %arg14[%c0_55, %c0_56, %c0_57] : memref<1x512x128xbf16, #tpu.memory_space<vmem>>, vector<1x512x128xbf16>
    %117 = vector.shape_cast %116 : vector<1x512x128xbf16> to vector<512x128xbf16>
    %cst_58 = arith.constant dense<0.000000e+00> : vector<32x128xf32>
    %118 = tpu.matmul %115, %117, %cst_58 {dimension_numbers = #tpu.dot_dimension_numbers<[1], [0], [0], [1], [0, 0, 1, 1], [], []>} : vector<32x512xbf16>, vector<512x128xbf16>, vector<32x128xf32> -> vector<32x128xf32>
    %119 = arith.addf %67, %118 : vector<32x128xf32>
    %c0_59 = arith.constant 0 : index
    %c0_60 = arith.constant 0 : index
    %c0_61 = arith.constant 0 : index
    %120 = vector.load %arg15[%c0_59, %c0_60, %c0_61] : memref<1x1x128xf32, #tpu.memory_space<vmem>>, vector<1x1x128xf32>
    %121 = vector.shape_cast %120 : vector<1x1x128xf32> to vector<1x128xf32>
    %122 = vector.broadcast %121 : vector<1x128xf32> to vector<32x128xf32>
    %123 = arith.addf %119, %122 : vector<32x128xf32>
    %c1_i32 = arith.constant 1 : i32
    %124 = arith.cmpi ne, %arg0, %c1_i32 : i32
    %125 = arith.extui %124 : i1 to i32
    %c0_i32_62 = arith.constant 0 : i32
    %126 = arith.cmpi ne, %125, %c0_i32_62 : i32
    scf.if %126 {
      %c0_65 = arith.constant 0 : index
      %c0_66 = arith.constant 0 : index
      %130 = vector.load %arg18[%c0_65, %c0_66] : memref<32x128xf32, #tpu.memory_space<vmem>>, vector<32x128xf32>
      tpu.vector_store %arg18[%c0_65, %c0_66], %123 {strides = array<i32>} : memref<32x128xf32, #tpu.memory_space<vmem>>, vector<32x128xf32>,
    } else {
    }
    %c1_i32_63 = arith.constant 1 : i32
    %127 = arith.cmpi eq, %arg0, %c1_i32_63 : i32
    %128 = arith.extui %127 : i1 to i32
    %c0_i32_64 = arith.constant 0 : i32
    %129 = arith.cmpi ne, %128, %c0_i32_64 : i32
    scf.if %129 {
      %c0_65 = arith.constant 0 : index
      %c0_66 = arith.constant 0 : index
      %130 = vector.load %arg16[%c0_65, %c0_66] : memref<1x128xf32, #tpu.memory_space<vmem>>, vector<1x128xf32>
      %c0_67 = arith.constant 0 : index
      %c0_68 = arith.constant 0 : index
      %131 = vector.load %arg17[%c0_67, %c0_68] : memref<1x128xf32, #tpu.memory_space<vmem>>, vector<1x128xf32>
      %cst_69 = arith.constant dense<0.000000e+00> : vector<32xf32>
      %132 = vector.multi_reduction <add>, %123, %cst_69 [1] : vector<32x128xf32> to vector<32xf32>
      %133 = vector.shape_cast %132 : vector<32xf32> to vector<32x1xf32>
      %cst_70 = arith.constant 1.280000e+02 : f32
      %134 = vector.broadcast %cst_70 : f32 to vector<32x1xf32>
      %135 = arith.divf %133, %134 : vector<32x1xf32>
      %136 = vector.broadcast %135 : vector<32x1xf32> to vector<32x128xf32>
      %137 = arith.subf %123, %136 : vector<32x128xf32>
      %138 = arith.mulf %137, %137 : vector<32x128xf32>
      %cst_71 = arith.constant dense<0.000000e+00> : vector<32xf32>
      %139 = vector.multi_reduction <add>, %138, %cst_71 [1] : vector<32x128xf32> to vector<32xf32>
      %140 = vector.shape_cast %139 : vector<32xf32> to vector<32x1xf32>
      %cst_72 = arith.constant 1.280000e+02 : f32
      %141 = vector.broadcast %cst_72 : f32 to vector<32x1xf32>
      %142 = arith.divf %140, %141 : vector<32x1xf32>
      %143 = vector.broadcast %135 : vector<32x1xf32> to vector<32x128xf32>
      %144 = arith.subf %123, %143 : vector<32x128xf32>
      %cst_73 = arith.constant 9.99999974E-6 : f32
      %145 = vector.broadcast %cst_73 : f32 to vector<32x1xf32>
      %146 = arith.addf %142, %145 : vector<32x1xf32>
      %147 = math.rsqrt %146 : vector<32x1xf32>
      %148 = vector.broadcast %147 : vector<32x1xf32> to vector<32x128xf32>
      %149 = arith.mulf %144, %148 : vector<32x128xf32>
      %150 = vector.broadcast %130 : vector<1x128xf32> to vector<32x128xf32>
      %151 = arith.mulf %149, %150 : vector<32x128xf32>
      %152 = vector.broadcast %131 : vector<1x128xf32> to vector<32x128xf32>
      %153 = arith.addf %151, %152 : vector<32x128xf32>
      %c0_74 = arith.constant 0 : index
      %c0_75 = arith.constant 0 : index
      %154 = vector.load %arg18[%c0_74, %c0_75] : memref<32x128xf32, #tpu.memory_space<vmem>>, vector<32x128xf32>
      tpu.vector_store %arg18[%c0_74, %c0_75], %153 {strides = array<i32>} : memref<32x128xf32, #tpu.memory_space<vmem>>, vector<32x128xf32>,
    } else {
    }
    return
  }
  func.func @transform_1(%arg0: i32) -> (i32, i32) {
    %c0_i32 = arith.constant 0 : i32
    %c0_i32_0 = arith.constant 0 : i32
    %c0_i32_1 = arith.constant 0 : i32
    return %c0_i32, %c0_i32_0 : i32, i32
  }
  func.func @transform_2(%arg0: i32) -> (i32, i32) {
    %c0_i32 = arith.constant 0 : i32
    %c0_i32_0 = arith.constant 0 : i32
    %c0_i32_1 = arith.constant 0 : i32
    return %c0_i32, %c0_i32_0 : i32, i32
  }
  func.func @transform_3(%arg0: i32) -> (i32, i32) {
    %c0_i32 = arith.constant 0 : i32
    %c0_i32_0 = arith.constant 0 : i32
    %c0_i32_1 = arith.constant 0 : i32
    return %c0_i32, %c0_i32_0 : i32, i32
  }
  func.func @transform_4(%arg0: i32) -> (i32, i32, i32) {
    %c0_i32 = arith.constant 0 : i32
    %c0_i32_0 = arith.constant 0 : i32
    %c0_i32_1 = arith.constant 0 : i32
    return %arg0, %c0_i32, %c0_i32_0 : i32, i32, i32
  }
  func.func @transform_5(%arg0: i32) -> (i32, i32, i32) {
    %c0_i32 = arith.constant 0 : i32
    %c0_i32_0 = arith.constant 0 : i32
    %c0_i32_1 = arith.constant 0 : i32
    return %arg0, %c0_i32, %c0_i32_0 : i32, i32, i32
  }
  func.func @transform_6(%arg0: i32) -> (i32, i32, i32) {
    %c0_i32 = arith.constant 0 : i32
    %c0_i32_0 = arith.constant 0 : i32
    %c0_i32_1 = arith.constant 0 : i32
    return %arg0, %c0_i32, %c0_i32_0 : i32, i32, i32
  }
  func.func @transform_7(%arg0: i32) -> (i32, i32, i32) {
    %c0_i32 = arith.constant 0 : i32
    %c0_i32_0 = arith.constant 0 : i32
    %c0_i32_1 = arith.constant 0 : i32
    return %arg0, %c0_i32, %c0_i32_0 : i32, i32, i32
  }
  func.func @transform_8(%arg0: i32) -> (i32, i32, i32) {
    %c0_i32 = arith.constant 0 : i32
    %c0_i32_0 = arith.constant 0 : i32
    %c0_i32_1 = arith.constant 0 : i32
    return %arg0, %c0_i32, %c0_i32_0 : i32, i32, i32
  }
  func.func @transform_9(%arg0: i32) -> (i32, i32, i32) {
    %c0_i32 = arith.constant 0 : i32
    %c0_i32_0 = arith.constant 0 : i32
    %c0_i32_1 = arith.constant 0 : i32
    return %arg0, %c0_i32, %c0_i32_0 : i32, i32, i32
  }
  func.func @transform_10(%arg0: i32) -> (i32, i32, i32) {
    %c0_i32 = arith.constant 0 : i32
    %c0_i32_0 = arith.constant 0 : i32
    %c0_i32_1 = arith.constant 0 : i32
    return %arg0, %c0_i32, %c0_i32_0 : i32, i32, i32
  }
  func.func @transform_11(%arg0: i32) -> (i32, i32, i32) {
    %c0_i32 = arith.constant 0 : i32
    %c0_i32_0 = arith.constant 0 : i32
    %c0_i32_1 = arith.constant 0 : i32
    return %arg0, %c0_i32, %c0_i32_0 : i32, i32, i32
  }
  func.func @transform_12(%arg0: i32) -> (i32, i32, i32) {
    %c0_i32 = arith.constant 0 : i32
    %c0_i32_0 = arith.constant 0 : i32
    %c0_i32_1 = arith.constant 0 : i32
    return %arg0, %c0_i32, %c0_i32_0 : i32, i32, i32
  }
  func.func @transform_13(%arg0: i32) -> (i32, i32, i32) {
    %c0_i32 = arith.constant 0 : i32
    %c0_i32_0 = arith.constant 0 : i32
    %c0_i32_1 = arith.constant 0 : i32
    return %arg0, %c0_i32, %c0_i32_0 : i32, i32, i32
  }
  func.func @transform_14(%arg0: i32) -> (i32, i32, i32) {
    %c0_i32 = arith.constant 0 : i32
    %c0_i32_0 = arith.constant 0 : i32
    %c0_i32_1 = arith.constant 0 : i32
    return %arg0, %c0_i32, %c0_i32_0 : i32, i32, i32
  }
  func.func @transform_15(%arg0: i32) -> (i32, i32) {
    %c0_i32 = arith.constant 0 : i32
    %c0_i32_0 = arith.constant 0 : i32
    %c0_i32_1 = arith.constant 0 : i32
    return %c0_i32, %c0_i32_0 : i32, i32
  }
  func.func @transform_16(%arg0: i32) -> (i32, i32) {
    %c0_i32 = arith.constant 0 : i32
    %c0_i32_0 = arith.constant 0 : i32
    %c0_i32_1 = arith.constant 0 : i32
    return %c0_i32, %c0_i32_0 : i32, i32
  }
  func.func @transform_17(%arg0: i32) -> (i32, i32) {
    %c0_i32 = arith.constant 0 : i32
    %c0_i32_0 = arith.constant 0 : i32
    %c0_i32_1 = arith.constant 0 : i32
    return %c0_i32, %c0_i32_0 : i32, i32
  }
}

</mosaic_0001>

<bundles_post_ra>
// kernel: tpu_custom_call.1
= control target key start
LH: loop header
LB: loop body
LE: loop exit
PB: predicated region body
PF: predicated region fallthrough
CT: control target
= control target key end

     0   :  { %s4748_s0 = inlined_call_operand.hbm [shape: f32[32,128], index: 0, kind: input, shape index: {}]   ;;  %s4749_s1 = inlined_call_operand.hbm [shape: f32[32,128], index: 1, kind: input, shape index: {}]   ;;  %s4750_s2 = inlined_call_operand.hbm [shape: f32[128,128], index: 2, kind: input, shape index: {}]   ;;  %s4751_s3 = inlined_call_operand.hbm [shape: f32[128,128], index: 3, kind: input, shape index: {}]   ;;  %s4752_s4 = inlined_call_operand.vmem [shape: f32[2,1,128], index: 4, kind: input, shape index: {}]   ;;  %s4753_s5 = inlined_call_operand.vmem [shape: f32[2,1,128], index: 5, kind: input, shape index: {}]   ;;  %s4754_s6 = inlined_call_operand.hbm [shape: bf16[2,128,384], index: 6, kind: input, shape index: {}]   ;;  %s4755_s7 = inlined_call_operand.hbm [shape: bf16[2,128,128], index: 7, kind: input, shape index: {}]   ;;  %s4756_s8 = inlined_call_operand.vmem [shape: f32[2,1,128], index: 8, kind: input, shape index: {}]   ;;  %s4757_s9 = inlined_call_operand.vmem [shape: f32[2,1,128], index: 9, kind: input, shape index: {}]   ;;  %s4758_s10 = inlined_call_operand.vmem [shape: f32[2,1,128], index: 10, kind: input, shape index: {}]   ;;  %s4759_s11 = inlined_call_operand.hbm [shape: bf16[2,128,512], index: 11, kind: input, shape index: {}]   ;;  %s4760_s12 = inlined_call_operand.vmem [shape: f32[2,1,512], index: 12, kind: input, shape index: {}]   ;;  %s4761_s13 = inlined_call_operand.hbm [shape: bf16[2,512,128], index: 13, kind: input, shape index: {}]   ;;  %s4762_s14 = inlined_call_operand.vmem [shape: f32[2,1,128], index: 14, kind: input, shape index: {}]   ;;  %s4763_s15 = inlined_call_operand.vmem [shape: f32[1,128], index: 15, kind: input, shape index: {}]   ;;  %s4764_s16 = inlined_call_operand.vmem [shape: f32[1,128], index: 16, kind: input, shape index: {}]   ;;  %s4765_s17 = inlined_call_operand.hbm [shape: f32[32,128], index: 17, kind: output, shape index: {}]  }
   0x1   :  { %4794 = sst [smem:[#allocation32_spill]] %s4748_s0 }
   0x2   :  { %4795 = sst [smem:[#allocation33_spill]] %s4749_s1 }
   0x3   :  { %4796 = sst [smem:[#allocation34_spill]] %s4750_s2 }
   0x4   :  { %4797 = sst [smem:[#allocation35_spill]] %s4752_s4 }
   0x5   :  { %4798 = sst [smem:[#allocation36_spill]] %s4753_s5 }
   0x6   :  { %4799 = sst [smem:[#allocation37_spill]] %s4754_s6 }
   0x7   :  { %4800 = sst [smem:[#allocation38_spill]] %s4756_s8 }
   0x8   :  { %4801 = sst [smem:[#allocation39_spill]] %s4757_s9 }
   0x9   :  { %4802 = sst [smem:[#allocation40_spill]] %s4758_s10 }
   0xa   :  { %4803 = sst [smem:[#allocation41_spill]] %s4759_s11 }
   0xb   :  { %4804 = sst [smem:[#allocation42_spill]] %s4760_s12 }
   0xc   :  { %4805 = sst [smem:[#allocation43_spill]] %s4762_s14 }
   0xd   :  { %4806 = sst [smem:[#allocation44_spill]] %s4763_s15 }
   0xe   :  { %4807 = sst [smem:[#allocation45_spill]] %s4764_s16 }
   0xf   :  { %4808 = sst [smem:[#allocation46_spill]] %s4765_s17 }
  0x10   :  { %22 = vsyncpa [#allocation3], 0 }
  0x11   :  { %23 = vsyncpa [#allocation6], 0 }
  0x12   :  { %24 = vsyncpa [#allocation9], 0 }
  0x13   :  { %26 = vsyncpa [#allocation9 + $0x1], 0 }
  0x14   :  { %27 = vsyncpa [#allocation12], 0 }
  0x15   :  { %29 = vsyncpa [#allocation12 + $0x1], 0 }
  0x16   :  { %30 = vsyncpa [#allocation4], 0  ;;  %s3916_s24 = smov 0   ;;  %s3918_s25 = smov 0  }
  0x17   :  { %s3920_s26 = smov 0   ;;  %s3922_s27 = smov 0  }
  0x18 LB: > { %4809 = sst [smem:[#allocation26_spill]] %s3796_s25  ;;  %s3935_s28 = sadd.s32 4294967295, %s3804_s27   ;;  %s3804_s27 = sphi %s3922_s27, %s4869_s27   ;;  %s3800_s26 = sphi %s3920_s26, %s4872_s26   ;;  %s3796_s25 = sphi %s3918_s25, %s4871_s25   ;;  %s3792_s24 = sphi %s3916_s24, %s4870_s24  }
  0x19   : > { %4810 = sst [smem:[#allocation27_spill]] %s3800_s26  ;;  %s3938_s29 = sadd.s32 1, %s3804_s27  }
  0x1a   : > { %4811 = sst [smem:[#allocation28_spill]] %s3935_s28  ;;  %s155_s0 = ssub.s32 %s3804_s27, %s3938_s29 }
  0x1b   : > { %4812 = sst [smem:[#allocation29_spill]] %s3938_s29  ;;  %s158_s30 = sadd.s32 1, %s3800_s26 }
  0x1c   : > { %p156_p0 = scmp.eq.s32.totalorder %s155_s0, 0  ;;  %p165_p1 = scmp.ne.s32.totalorder %s3800_s26, %s3796_s25 }
  0x1d   : > { %p166_p2 = scmp.eq.s32.totalorder %s3804_s27, 0  ;;  %p171_p3 = scmp.ne.s32.totalorder %s3796_s25, %s3792_s24 }
  0x1e   : > { %s3948_s18 = scalar_select %p156_p0, %s3800_s26, %s158_s30  }
  0x1f   : > { %p3950_p4 = por %p166_p2, %p165_p1  ;;  %p4772_p5 = scmp.eq.s32.totalorder %s3935_s28, 0 }
  0x20   : > { %4813 = sst [smem:[#allocation30_spill]] %s3948_s18  ;;  %p2778_p6 = scmp.ge.s32.totalorder %s3804_s27, 1 }
  0x21   : > { %s4814_s19 = scalar_select %p3950_p4, 1, 0 }
  0x22   : > { %p453_p7 = scmp.lt.s32.totalorder %s3804_s27, 3  ;;  %p3959_p8 = por %p4772_p5, %p171_p3 }
  0x23   : > { %s3806_s21 = smov [#allocation5]   ;;  %s3979_s0 = sand.u32 1, %s3800_s26  }
  0x24   : > { %s4815_s1 = scalar_select %p3959_p8, 1, 0 }
  0x25   : > { %p3964_p10 = pnand %p2778_p6, %p453_p7  ;;  %s478_s22 = sshll.u32 %s3806_s21, 4  ;;  %s479_s22 = int_to_ptr.vmem [resolvable:$true] %s478_s22 }
  0x26   : > { %4816 = sst [smem:[#allocation31_spill]] %s4815_s1  ;;  %s4819_s2 = sld [smem:[#allocation34_spill]] }
  0x27   : > { %s4817_s20 = scalar_select %p3964_p10, 1, 0 }
  0x28   : > { %p3224_p11 = pneg %p3964_p10 }
  0x2a   : > { %p3972_p12 = pnand %p3224_p11, %p4772_p5 }
  0x2c   : > { %s4818_s23 = scalar_select %p3972_p12, 1, 0 }
  0x2d   : > { %s3500_s29 = scalar_lea.hbm %s4819_s2, 2048  ;;  %p3989_p1 = pneg %p3972_p12 }
  0x2e   : > { %p3501_p0 = scmp.ne.s32.totalorder %s4819_s2, %s3500_s29  ;;  %p3507_p6 = scmp.lt.u32.totalorder %s3500_s29, %s4819_s2 }
  0x2f   : > { %s4820_s21 = scalar_select %p3989_p1, 1, 0 }
  0x30   : > { %p3503_p2 = pnand %p3989_p1, %p3501_p0 }
  0x32   : > { %p3504_p3 = pneg %p3503_p2 }
  0x34   : > { %p3509_p7 = pnand %p3507_p6, %p3504_p3 }
  0x36   : > { %3512 = shalt.err (!%p3509_p7)
}
  0x37   : > { %s3513_s18 = scalar_lea.vmem %s479_s22, 2048  ;;  %p3521_p13 = scmp.lt.s32.totalorder %s479_s22, %s479_s22 }
  0x38   : > { %p3514_p11 = scmp.ne.s32.totalorder %s479_s22, %s3513_s18  ;;  %p3522_p8 = scmp.lt.s32.totalorder %s3513_s18, %s3513_s18 }
  0x3a   : > { %p3516_p9 = pnand %p3514_p11, %p3989_p1  ;;  %p3523_p10 = por %p3522_p8, %p3521_p13 }
  0x3c   : > { %p3517_p5 = pneg %p3516_p9 }
  0x3e   : > { %p3524_p4 = pnand %p3523_p10, %p3517_p5 }
  0x40   : > { %3527 = shalt.err (!%p3524_p4)
}
  0x41   : > { %s4775_s16 = smov 128   ;;  %s4777_s17 = smov 8  }
  0x42   : > { %3230 = dma.hbm_to_vmem [thread:$0]  (!%p3972_p12), %s4819_s2, 2048, %s479_s22, [#allocation6], %s4775_s16, %s4775_s16, %s4777_s17  }
  0x43   : > { %s3197_s24 = smul.u32 192, %s3979_s0  ;;  %p4821_p8 = scmp.ne.s32.totalorder %s4814_s19, 0 }
  0x44   : > { %p4822_p5 = scmp.lt.s32.totalorder %s3804_s27, 2  ;;  %s3198_s18 = smul.u32 3072, %s3804_s27 }
  0x45   : > { %s4824_s6 = sld [smem:[#allocation37_spill]]  ;;  %s527_s26 = scalar_lea.vmem [#allocation8], %s3197_s24 }
  0x46   : > { %p4013_p4 = pnand %p4822_p5, %p4821_p8  ;;  %s534_s22 = sshll.u32 %s527_s26, 4  ;;  %s4023_s22 = int_to_ptr.vmem [resolvable:$true] %s534_s22 }
  0x47   : > { %s4825_s19 = sand.u32 1, %s3804_s27  }
  0x48   : > { %s4823_s30 = scalar_select %p4013_p4, 1, 0 }
  0x49   : > { %s4027_s29 = scalar_lea.sflag [#allocation9], %s4825_s19  ;;  %p4033_p10 = pneg %p4013_p4 }
  0x4b   : > { %s4021_s12 = scalar_lea.hbm %s4824_s6, %s3198_s18  ;;  %s3533_s24 = scalar_lea.hbm %s4824_s6, 6144 }
  0x4c   : > { %s3528_s16 = scalar_lea.hbm %s4021_s12, 3072  ;;  %p3534_p2 = scmp.lt.u32.totalorder %s4021_s12, %s4824_s6 }
  0x4d   : > { %p3529_p9 = scmp.ne.s32.totalorder %s4021_s12, %s3528_s16  ;;  %p3535_p3 = scmp.lt.u32.totalorder %s3533_s24, %s3528_s16 }
  0x4e   : > { %s4826_s17 = scalar_select %p4033_p10, 1, 0 }
  0x4f   : > { %p3531_p13 = pnand %p4033_p10, %p3529_p9  ;;  %p3536_p6 = por %p3535_p3, %p3534_p2 }
  0x50   : > { %p3537_p7 = scmp.lt.u32.totalorder %s3528_s16, %s4021_s12 }
  0x51   : > { %p3532_p0 = pneg %p3531_p13 }
  0x52   : > { %p3538_p11 = por %p3537_p7, %p3536_p6 }
  0x54   : > { %p3539_p8 = pnand %p3538_p11, %p3532_p0 }
  0x56   : > { %3542 = shalt.err (!%p3539_p8)
}
  0x57   : > { %s3543_s19 = scalar_lea.vmem %s4023_s22, 3072  ;;  %s3809_s14 = smov [#allocation8]  }
  0x58   : > { %p3544_p5 = scmp.ne.s32.totalorder %s4023_s22, %s3543_s19  ;;  %s3548_s15 = sshll.u32 %s3809_s14, 4  ;;  %s3549_s15 = int_to_ptr.vmem [resolvable:$false] %s3548_s15 }
  0x59   : > { %s3550_s18 = scalar_lea.vmem %s3549_s15, 6144  ;;  %p3551_p12 = scmp.lt.s32.totalorder %s4023_s22, %s3549_s15 }
  0x5a   : > { %p3546_p9 = pnand %p3544_p5, %p4033_p10  ;;  %p3552_p1 = scmp.lt.s32.totalorder %s3550_s18, %s3543_s19 }
  0x5c   : > { %p3547_p13 = pneg %p3546_p9  ;;  %p3553_p2 = por %p3552_p1, %p3551_p12 }
  0x5e   : > { %p3554_p3 = pnand %p3553_p2, %p3547_p13 }
  0x60   : > { %3557 = shalt.err (!%p3554_p3)
}
  0x61   : > { %s3810_s16 = smov 192   ;;  %s3811_s24 = smov 12  }
  0x62   : > { %3237 = dma.hbm_to_vmem [thread:$0]  (!%p4013_p4), %s4021_s12, 3072, %s4023_s22, %s4027_s29, %s3810_s16, %s3810_s16, %s3811_s24  }
  0x63   : > { %s2787_s26 = sshll.u32 %s3979_s0, 8  ;;  %s2913_s14 = sshll.u32 %s3804_s27, 12 }
  0x64   : > { %s4827_s11 = sld [smem:[#allocation41_spill]]  ;;  %s587_s2 = scalar_lea.vmem [#allocation11], %s2787_s26 }
  0x65   : > { %s594_s6 = sshll.u32 %s587_s2, 4  ;;  %s4828_s10 = sand.u32 1, %s3804_s27   ;;  %s4068_s6 = int_to_ptr.vmem [resolvable:$true] %s594_s6 }
  0x66   : > { %s4072_s9 = scalar_lea.sflag [#allocation12], %s4828_s10 }
  0x6a   : > { %s4064_s18 = scalar_lea.hbm %s4827_s11, %s2913_s14  ;;  %s3563_s24 = scalar_lea.hbm %s4827_s11, 8192 }
  0x6b   : > { %s3558_s12 = scalar_lea.hbm %s4064_s18, 4096  ;;  %p3564_p6 = scmp.lt.u32.totalorder %s4064_s18, %s4827_s11 }
  0x6c   : > { %p3559_p12 = scmp.ne.s32.totalorder %s4064_s18, %s3558_s12  ;;  %p3565_p7 = scmp.lt.u32.totalorder %s3563_s24, %s3558_s12 }
  0x6d   : > { %p3567_p8 = scmp.lt.u32.totalorder %s3558_s12, %s4064_s18 }
  0x6e   : > { %p3561_p1 = pnand %p3559_p12, %p4033_p10  ;;  %p3566_p11 = por %p3565_p7, %p3564_p6 }
  0x70   : > { %p3562_p0 = pneg %p3561_p1  ;;  %p3568_p5 = por %p3567_p8, %p3566_p11 }
  0x72   : > { %p3569_p9 = pnand %p3568_p5, %p3562_p0 }
  0x74   : > { %3572 = shalt.err (!%p3569_p9)
}
  0x75   : > { %s3573_s2 = scalar_lea.vmem %s4068_s6, 4096  ;;  %s3812_s10 = smov [#allocation11]  }
  0x76   : > { %p3574_p13 = scmp.ne.s32.totalorder %s4068_s6, %s3573_s2  ;;  %s3578_s22 = sshll.u32 %s3812_s10, 4  ;;  %s3579_s22 = int_to_ptr.vmem [resolvable:$false] %s3578_s22 }
  0x77   : > { %s3580_s16 = scalar_lea.vmem %s3579_s22, 8192  ;;  %p3581_p12 = scmp.lt.s32.totalorder %s4068_s6, %s3579_s22 }
  0x78   : > { %p3576_p2 = pnand %p3574_p13, %p4033_p10  ;;  %p3582_p1 = scmp.lt.s32.totalorder %s3580_s16, %s3573_s2 }
  0x7a   : > { %p3577_p3 = pneg %p3576_p2  ;;  %p3583_p6 = por %p3582_p1, %p3581_p12 }
  0x7c   : > { %p3584_p7 = pnand %p3583_p6, %p3577_p3 }
  0x7e   : > { %3587 = shalt.err (!%p3584_p7)
}
  0x7f   : > { %s3813_s12 = smov 256   ;;  %s3814_s24 = smov 16  }
  0x80   : > { %3243 = dma.hbm_to_vmem [thread:$0]  (!%p4013_p4), %s4064_s18, 4096, %s4068_s6, %s4072_s9, %s3813_s12, %s3813_s12, %s3814_s24  }
  0x81   : > { %s4101_s10 = scalar_lea.hbm %s4761_s13, %s2913_s14  ;;  %s615_s2 = scalar_lea.vmem [#allocation13], %s2787_s26 }
  0x82   : > { %s622_s22 = sshll.u32 %s615_s2, 4  ;;  %s3815_s16 = smov [#allocation2]   ;;  %s4105_s22 = int_to_ptr.vmem [resolvable:$true] %s622_s22 }
  0x83   : > { %s465_s11 = sshll.u32 %s3815_s16, 4  ;;  %s3816_s8 = smov [#allocation7]   ;;  %s466_s11 = int_to_ptr.vmem [resolvable:$true] %s465_s11 }
  0x84   : > { %s491_s5 = sshll.u32 %s3816_s8, 4  ;;  %s4829_s25 = sld [smem:[#allocation33_spill]]  ;;  %s492_s5 = int_to_ptr.vmem [resolvable:$true] %s491_s5 }
  0x85   : > { %p4831_p11 = scmp.ne.s32.totalorder %s4820_s21, 0 }
  0x8a   : > { %s4830_s28 = smov %s4829_s25  ;;  %s3588_s6 = scalar_lea.hbm %s4829_s25, 512 }
  0x8b   : > { %p3589_p0 = scmp.ne.s32.totalorder %s4830_s28, %s3588_s6  ;;  %p3595_p9 = scmp.lt.u32.totalorder %s3588_s6, %s4830_s28 }
  0x8d   : > { %p3591_p8 = pnand %p3589_p0, %p4831_p11 }
  0x8f   : > { %p3592_p5 = pneg %p3591_p8 }
  0x91   : > { %p3597_p13 = pnand %p3595_p9, %p3592_p5 }
  0x93   : > { %3600 = shalt.err (!%p3597_p13)
}
  0x94   : > { %s3601_s24 = scalar_lea.vmem %s466_s11, 512  ;;  %p3609_p1 = scmp.lt.s32.totalorder %s466_s11, %s466_s11 }
  0x95   : > { %p3602_p2 = scmp.ne.s32.totalorder %s466_s11, %s3601_s24  ;;  %p3610_p6 = scmp.lt.s32.totalorder %s3601_s24, %s3601_s24 }
  0x97   : > { %p3604_p3 = pnand %p3602_p2, %p4831_p11  ;;  %p3611_p7 = por %p3610_p6, %p3609_p1 }
  0x99   : > { %p3605_p12 = pneg %p3604_p3 }
  0x9b   : > { %p3612_p4 = pnand %p3611_p7, %p3605_p12 }
  0x9d   : > { %3615 = shalt.err (!%p3612_p4)
}
  0x9e   : > { %p4832_p0 = scmp.ne.s32.totalorder %s4818_s23, 0  ;;  %s4833_s4 = smov 8  }
  0x9f   : > { %s4834_s8 = smov 128   ;;  %s2784_s19 = sshll.u32 %s3979_s0, 6 }
  0xa0   : > { %3227 = dma.hbm_to_vmem [thread:$0]  (!%p4832_p0), %s4830_s28, 512, %s466_s11, [#allocation3], %s4834_s8, %s4834_s8, %s4833_s4  }
  0xa1   : > { %s3616_s16 = scalar_lea.hbm %s4751_s3, 2048 }
  0xa2   : > { %p3617_p4 = scmp.ne.s32.totalorder %s4751_s3, %s3616_s16  ;;  %p3623_p9 = scmp.lt.u32.totalorder %s3616_s16, %s4751_s3 }
  0xa4   : > { %p3619_p8 = pnand %p3617_p4, %p4831_p11 }
  0xa6   : > { %p3620_p5 = pneg %p3619_p8 }
  0xa8   : > { %p3625_p13 = pnand %p3623_p9, %p3620_p5 }
  0xaa   : > { %3628 = shalt.err (!%p3625_p13)
}
  0xab   : > { %s3629_s11 = scalar_lea.vmem %s492_s5, 2048  ;;  %p3637_p1 = scmp.lt.s32.totalorder %s492_s5, %s492_s5 }
  0xac   : > { %p3630_p2 = scmp.ne.s32.totalorder %s492_s5, %s3629_s11  ;;  %p3638_p6 = scmp.lt.s32.totalorder %s3629_s11, %s3629_s11 }
  0xae   : > { %p3632_p3 = pnand %p3630_p2, %p4831_p11  ;;  %p3639_p7 = por %p3638_p6, %p3637_p1 }
  0xb0   : > { %p3633_p12 = pneg %p3632_p3 }
  0xb2   : > { %p3640_p10 = pnand %p3639_p7, %p3633_p12 }
  0xb4   : > { %3643 = shalt.err (!%p3640_p10)
}
  0xb5   : > { %3233 = dma.hbm_to_vmem [thread:$0]  (!%p4832_p0), %s4751_s3, 2048, %s492_s5, [#allocation6], %s4834_s8, %s4834_s8, %s4833_s4  }
  0xb6   : > { %s2912_s24 = sshll.u32 %s3804_s27, 10  ;;  %s548_s23 = scalar_lea.vmem [#allocation10], %s2784_s19 }
  0xb7   : > { %s4154_s1 = scalar_lea.hbm %s4755_s7, %s2912_s24  ;;  %s555_s15 = sshll.u32 %s548_s23, 4  ;;  %s4156_s15 = int_to_ptr.vmem [resolvable:$true] %s555_s15 }
  0xb8   : > { %s3644_s2 = scalar_lea.hbm %s4154_s1, 1024  ;;  %p4835_p11 = scmp.ne.s32.totalorder %s4826_s17, 0 }
  0xb9   : > { %p3645_p10 = scmp.ne.s32.totalorder %s4154_s1, %s3644_s2  ;;  %s3649_s4 = scalar_lea.hbm %s4755_s7, 2048 }
  0xba   : > { %p3650_p0 = scmp.lt.u32.totalorder %s4154_s1, %s4755_s7  ;;  %p3651_p5 = scmp.lt.u32.totalorder %s3649_s4, %s3644_s2 }
  0xbb   : > { %p3647_p4 = pnand %p3645_p10, %p4835_p11  ;;  %p3653_p13 = scmp.lt.u32.totalorder %s3644_s2, %s4154_s1 }
  0xbc   : > { %p3652_p9 = por %p3651_p5, %p3650_p0 }
  0xbd   : > { %p3648_p8 = pneg %p3647_p4 }
  0xbe   : > { %p3654_p2 = por %p3653_p13, %p3652_p9 }
  0xc0   : > { %p3655_p3 = pnand %p3654_p2, %p3648_p8 }
  0xc2   : > { %3658 = shalt.err (!%p3655_p3)
}
  0xc3   : > { %s3659_s19 = scalar_lea.vmem %s4156_s15, 1024  ;;  %s3817_s6 = smov [#allocation10]  }
  0xc4   : > { %p3660_p12 = scmp.ne.s32.totalorder %s4156_s15, %s3659_s19  ;;  %s3664_s18 = sshll.u32 %s3817_s6, 4  ;;  %s3665_s18 = int_to_ptr.vmem [resolvable:$false] %s3664_s18 }
  0xc5   : > { %s3666_s12 = scalar_lea.vmem %s3665_s18, 2048  ;;  %p3667_p7 = scmp.lt.s32.totalorder %s4156_s15, %s3665_s18 }
  0xc6   : > { %p3662_p1 = pnand %p3660_p12, %p4835_p11  ;;  %p3668_p10 = scmp.lt.s32.totalorder %s3666_s12, %s3659_s19 }
  0xc8   : > { %p3663_p6 = pneg %p3662_p1  ;;  %p3669_p4 = por %p3668_p10, %p3667_p7 }
  0xca   : > { %p3670_p0 = pnand %p3669_p4, %p3663_p6 }
  0xcc   : > { %3673 = shalt.err (!%p3670_p0)
}
  0xcd   : > { %s3818_s26 = smov 64   ;;  %s3819_s11 = smov 4  }
  0xce   : > { %p4836_p8 = scmp.ne.s32.totalorder %s4823_s30, 0  ;;  %s3674_s0 = scalar_lea.hbm %s4101_s10, 4096 }
  0xcf   : > { %p3675_p5 = scmp.ne.s32.totalorder %s4101_s10, %s3674_s0  ;;  %s3679_s21 = scalar_lea.hbm %s4761_s13, 8192 }
  0xd0   : > { %3240 = dma.hbm_to_vmem [thread:$0]  (!%p4836_p8), %s4154_s1, 1024, %s4156_s15, %s4027_s29, %s3818_s26, %s3818_s26, %s3819_s11  }
  0xd1   : > { %p3677_p9 = pnand %p3675_p5, %p4835_p11  ;;  %p3680_p2 = scmp.lt.u32.totalorder %s4101_s10, %s4761_s13 }
  0xd2   : > { %p3681_p3 = scmp.lt.u32.totalorder %s3679_s21, %s3674_s0  ;;  %p3683_p1 = scmp.lt.u32.totalorder %s3674_s0, %s4101_s10 }
  0xd3   : > { %p3678_p13 = pneg %p3677_p9 }
  0xd4   : > { %p3682_p12 = por %p3681_p3, %p3680_p2 }
  0xd6   : > { %p3684_p6 = por %p3683_p1, %p3682_p12 }
  0xd8   : > { %p3685_p7 = pnand %p3684_p6, %p3678_p13 }
  0xda   : > { %3688 = shalt.err (!%p3685_p7)
}
  0xdb   : > { %s3689_s29 = scalar_lea.vmem %s4105_s22, 4096  ;;  %s3820_s1 = smov [#allocation13]  }
  0xdc   : > { %p3690_p10 = scmp.ne.s32.totalorder %s4105_s22, %s3689_s29  ;;  %s3694_s15 = sshll.u32 %s3820_s1, 4  ;;  %s3695_s15 = int_to_ptr.vmem [resolvable:$false] %s3694_s15 }
  0xdd   : > { %s3696_s2 = scalar_lea.vmem %s3695_s15, 8192  ;;  %p3697_p5 = scmp.lt.s32.totalorder %s4105_s22, %s3695_s15 }
  0xde   : > { %p3692_p4 = pnand %p3690_p10, %p4835_p11  ;;  %p3698_p9 = scmp.lt.s32.totalorder %s3696_s2, %s3689_s29 }
  0xe0   : > { %p3693_p0 = pneg %p3692_p4  ;;  %p3699_p2 = por %p3698_p9, %p3697_p5 }
  0xe2   : > { %p3700_p3 = pnand %p3699_p2, %p3693_p0 }
  0xe4   : > { %3703 = shalt.err (!%p3700_p3)
}
  0xe5   : > { %3246 = dma.hbm_to_vmem [thread:$0]  (!%p4836_p8), %s4101_s10, 4096, %s4105_s22, %s4072_s9, %s3818_s26, %s3818_s26, %s3819_s11  }
  0xe6   : > { %p4837_p11 = scmp.ne.s32.totalorder %s4817_s20, 0 }
  0xe7   : > { %s4838_s17 = sld [smem:[#allocation28_spill]] (!%p4837_p11) }
  0xe8   : > { %640 = sbr.rel (%p4837_p11) target bundleno = 3127 (0xc37), region = 84 }
  0xed   : > { %p4839_p13 = scmp.eq.s32.totalorder (!%p4837_p11), %s4838_s17, 0 }
  0xef   : > { %3769 = dma.done.wait (%p4839_p13), [#allocation3], 512   ;;  %p4840_p12 = pmov %p4839_p13 }
  0xf1   : > { %3771 = vsyncadd (%p4840_p12), [#allocation3], 4294966784  ;;  %p4841_p1 = pmov %p4840_p12 }
  0xf3   : > { %3773 = dma.done.wait (%p4841_p1), [#allocation6], 4096   ;;  %p4842_p6 = pmov %p4841_p1 }
  0xf4   : > { %s4843_s30 = sld [smem:[#allocation26_spill]]  ;;  %s4844_s5 = sld [smem:[#allocation31_spill]] }
  0xf5   : > { %3775 = vsyncadd (%p4842_p6), [#allocation6], 4294963200  ;;  %s654_s27 = sand.u32 1, %s4838_s17  }
  0xf6   : > { %s655_s20 = scalar_lea.sflag [#allocation9], %s654_s27 }
  0xfa   : > { %s656_s9 = sand.u32 1, %s4843_s30   ;;  %p4845_p8 = scmp.ne.s32.totalorder %s4844_s5, 0 }
  0xfb   : > { %s3199_s10 = smul.u32 192, %s656_s9 }
  0xfd   : > { %s4220_s22 = scalar_lea.vmem [#allocation8], %s3199_s10 }
  0xfe   : > { %3777 = dma.done.wait (%p4845_p8), %s655_s20, 4096  }
  0xff   : > { %3779 = vsyncadd (%p4845_p8), %s655_s20, 4294963200  ;;  %s2797_s4 = sshll.u32 %s656_s9, 6  ;;  %s2798_s8 = sshll.u32 %s656_s9, 8 }
 0x100   : > { %s4226_s16 = scalar_lea.vmem [#allocation10], %s2797_s4  ;;  %s673_s19 = scalar_lea.sflag [#allocation12], %s654_s27 }
 0x101   : > { %s4228_s6 = scalar_lea.vmem [#allocation11], %s2798_s8 }
 0x102   : > { %3781 = dma.done.wait (%p4845_p8), %s673_s19, 8192  }
 0x103   : > { %3783 = vsyncadd (%p4845_p8), %s673_s19, 4294959104  ;;  %p766_p7 = scmp.lt.s32.totalorder %s4838_s17, 1  ;;  %s4848_s1 = sld [smem:[#allocation38_spill]] }
 0x104   : > { %s4849_s5 = sld [smem:[#allocation39_spill]]  ;;  %s4850_s20 = sld [smem:[#allocation40_spill]] }
 0x105   : > { %s4236_s18 = scalar_select %p766_p7, %s4838_s17, 1 }
 0x106   : > { %s4851_s11 = sld [smem:[#allocation42_spill]]  ;;  %s4852_s21 = sld [smem:[#allocation43_spill]] }
 0x107   : > { %s2800_s19 = sshll.u32 %s4236_s18, 2  ;;  %s4268_s23 = scalar_lea.vmem [#allocation13], %s2798_s8 }
 0x108   : > { %p4853_p10 = scmp.ne.s32.totalorder %s4838_s17, 0 }
 0x109   : > { %s774_s15 = scalar_lea.vmem %s4848_s1, %s4236_s18 }
 0x10a   : > { %s777_s27 = scalar_lea.vmem %s4849_s5, %s4236_s18  ;;  %s780_s4 = scalar_lea.vmem %s4850_s20, %s4236_s18 }
 0x10b   : > { %792 = sbr.rel (%p4853_p10) target bundleno = 297 (0x129), region = 116 }
 0x10c   : > { %s4262_s0 = scalar_lea.vmem %s4851_s11, %s2800_s19  ;;  %s787_s25 = scalar_lea.vmem %s4852_s21, %s4236_s18 }
 0x112   : > { %s3821_s29 = smov [#allocation14]   ;;  %s4854_s5 = sld [smem:[#allocation32_spill]] }
 0x113   : > { %s800_s1 = sshll.u32 %s3821_s29, 4  ;;  %s801_s1 = int_to_ptr.vmem [resolvable:$true] %s800_s1 }
 0x118   : > { %s3704_s9 = scalar_lea.hbm %s4854_s5, 512 }
 0x119   : > { %p3705_p4 = scmp.ne.s32.totalorder %s4854_s5, %s3704_s9  ;;  %p3708_p0 = scmp.lt.u32.totalorder %s3704_s9, %s4854_s5 }
 0x11b   : > { %p3710_p5 = pnand %p3708_p0, %p3705_p4 }
 0x11d   : > { %3713 = shalt.err (!%p3710_p5)  }
 0x11e   : > { %s3714_s8 = scalar_lea.vmem %s801_s1, 512  ;;  %p3719_p2 = scmp.lt.s32.totalorder %s801_s1, %s801_s1 }
 0x11f   : > { %p3715_p9 = scmp.ne.s32.totalorder %s801_s1, %s3714_s8  ;;  %p3720_p3 = scmp.lt.s32.totalorder %s3714_s8, %s3714_s8 }
 0x121   : > { %p3721_p11 = por %p3720_p3, %p3719_p2 }
 0x123   : > { %p3722_p13 = pnand %p3721_p11, %p3715_p9 }
 0x125   : > { %3725 = shalt.err (!%p3722_p13)  }
 0x126   : > { %803 = dma.hbm_to_vmem [thread:$0]  %s4854_s5, 512, %s801_s1, [#allocation15] }
 0x127   : > { %3784 = dma.done.wait [#allocation15], 512 }
 0x128   : > { %3785 = vsyncadd [#allocation15], 4294966784 }
 0x129 PF: > { %v807_v0 = vld [vmem:[#allocation14] sm:$0xff]  ;;  %v809_v1 = vld [vmem:[#allocation14 + $0x10] sm:$0xff]  ;;  %v808_v2 = vld [vmem:[#allocation14 + $0x8] sm:$0xff]  ;;  %v3822_v39 = vmov 0   ;;  %s4855_s14 = sld [smem:[#allocation35_spill]]  ;;  %s4857_s1 = sld [smem:[#allocation36_spill]] }
 0x12a   : > { %813 = vadd.xlane.f32.xlu0 %v807_v0  ;;  %817 = vadd.xlane.f32.xlu1 %v809_v1  ;;  %v810_v3 = vld [vmem:[#allocation14 + $0x18] sm:$0xff]  ;;  %v3304_v4 = vld [vmem:[%s4220_s22 + $0x4] ss:$12 sps:$4 sm:$0xff]   ;;  %v3306_v5 = vld [vmem:[%s4220_s22] ss:$12 sps:$4 sm:$0xff]  }
 0x12b   : > { %v3307_v6 = vld [vmem:[%s4220_s22 + $0x1c] ss:$12 sps:$4 sm:$0xff]   ;;  %1040 = vmatprep.subr.bf16.mxu0 %v3304_v4  ;;  %v3310_v24 = vld [vmem:[%s4220_s22 + $0x18] ss:$12 sps:$4 sm:$0xff]   ;;  %v3311_v25 = vld [vmem:[%s4220_s22 + $0x34] ss:$12 sps:$4 sm:$0xff]   ;;  %1072 = vmatprep.mubr.bf16.mxu0 %v3822_v39 }
 0x12c   : > { %v3309_v7 = vld [vmem:[%s4220_s22 + $0x8] ss:$12 sps:$4 sm:$0xff]   ;;  %1041 = vmatpush1.bf16.msra.mxu0 %v3306_v5  ;;  %v3313_v26 = vld [vmem:[%s4220_s22 + $0x20] ss:$12 sps:$4 sm:$0xff]   ;;  %v3314_v27 = vld [vmem:[%s4220_s22 + $0x30] ss:$12 sps:$4 sm:$0xff]  }
 0x12d   : > { %3031 = vmatprep.subr.bf16.mxu1 %v3309_v7  ;;  %1042 = vmatprep.subr.bf16.mxu0 %v3307_v6  ;;  %v3315_v28 = vld [vmem:[%s4220_s22 + $0x4c] ss:$12 sps:$4 sm:$0xff]   ;;  %v3318_v30 = vld [vmem:[%s4220_s22 + $0x48] ss:$12 sps:$4 sm:$0xff]   ;;  %v3319_v31 = vld [vmem:[%s4220_s22 + $0x64] ss:$12 sps:$4 sm:$0xff]  }
 0x12e   : > { %815 = vadd.xlane.f32.xlu0 %v808_v2  ;;  %819 = vadd.xlane.f32.xlu1 %v810_v3  ;;  %v3317_v29 = vld [vmem:[%s4220_s22 + $0x38] ss:$12 sps:$4 sm:$0xff]   ;;  %v3321_v32 = vld [vmem:[%s4220_s22 + $0x50] ss:$12 sps:$4 sm:$0xff]   ;;  %v3322_v33 = vld [vmem:[%s4220_s22 + $0x60] ss:$12 sps:$4 sm:$0xff]  }
 0x12f   : > { %3032 = vmatpush3.bf16.msra.mxu1 %v3309_v7  ;;  %v3323_v34 = vld [vmem:[%s4220_s22 + $0x7c] ss:$12 sps:$4 sm:$0xff]   ;;  %v3326_v36 = vld [vmem:[%s4220_s22 + $0x78] ss:$12 sps:$4 sm:$0xff]   ;;  %v3327_v37 = vld [vmem:[%s4220_s22 + $0x94] ss:$12 sps:$4 sm:$0xff]   ;;  %s4856_s24 = scalar_lea.vmem %s4855_s14, %s4236_s18  ;;  %s4858_s2 = scalar_lea.vmem %s4857_s1, %s4236_s18 }
 0x130   : > { %1043 = vmatpush1.bf16.msra.mxu0 %v3310_v24  ;;  %3033 = vmatprep.subr.bf16.mxu1 %v3313_v26  ;;  %v3325_v35 = vld [vmem:[%s4220_s22 + $0x68] ss:$12 sps:$4 sm:$0xff]   ;;  %v3329_v38 = vld [vmem:[%s4220_s22 + $0x80] ss:$12 sps:$4 sm:$0xff]   ;;  %v3330_v40 = vld [vmem:[%s4220_s22 + $0x90] ss:$12 sps:$4 sm:$0xff]  }
 0x131   : > { %1044 = vmatprep.subr.bf16.mxu0 %v3311_v25  ;;  %v3331_v41 = vld [vmem:[%s4220_s22 + $0xac] ss:$12 sps:$4 sm:$0xff]   ;;  %v3334_v43 = vld [vmem:[%s4220_s22 + $0xa8] ss:$12 sps:$4 sm:$0xff]   ;;  %v3335_v44 = vld [vmem:[%s4220_s22 + $0xb0] ss:$12 sps:$4 sm:$0xff]  }
 0x132   : > { %v3333_v42 = vld [vmem:[%s4220_s22 + $0x98] ss:$12 sps:$4 sm:$0xff]   ;;  %v1282_v46 = vld [vmem:[#allocation7 + $0x8] sm:$0xff]  ;;  %v2802_v62 = vld [vmem:[%s4856_s24] ss:$0 sm:$0xff]  ;;  %s4863_s18 = sld [smem:[#allocation28_spill]] }
 0x133   : > { %3034 = vmatpush3.bf16.msra.mxu1 %v3313_v26  ;;  %v1281_v45 = vld [vmem:[#allocation7] sm:$0xff]  ;;  %v1290_v26 = vld [vmem:[#allocation7 + $0x48] sm:$0xff] }
 0x134   : > { %1045 = vmatpush1.bf16.msra.mxu0 %v3314_v27  ;;  %3035 = vmatprep.subr.bf16.mxu1 %v3317_v29  ;;  %v3149_v47 = vpack.c.bf16 %v1282_v46, %v1281_v45  ;;  %v1289_v25 = vld [vmem:[#allocation7 + $0x40] sm:$0xff]  ;;  %v1151_v46 = vld [vmem:[#allocation5 + $0x48] sm:$0xff] }
 0x135   : > { %1046 = vmatprep.subr.bf16.mxu0 %v3315_v28  ;;  %v3165_v27 = vpack.c.bf16 %v1290_v26, %v1289_v25  ;;  %v1291_v28 = vld [vmem:[#allocation7 + $0x50] sm:$0xff] }
 0x137   : > { %3036 = vmatpush3.bf16.msra.mxu1 %v3317_v29  ;;  %v1292_v29 = vld [vmem:[#allocation7 + $0x58] sm:$0xff] }
 0x138   : > { %1047 = vmatpush1.bf16.msra.mxu0 %v3318_v30  ;;  %3037 = vmatprep.subr.bf16.mxu1 %v3321_v32  ;;  %v3169_v30 = vpack.c.bf16 %v1292_v29, %v1291_v28  ;;  %p2904_p12 = scmp.eq.s32.totalorder %s4863_s18, 1 }
 0x139   : > { %1048 = vmatprep.subr.bf16.mxu0 %v3319_v31  ;;  %v1293_v31 = vld [vmem:[#allocation7 + $0x60] sm:$0xff] }
 0x13b   : > { %3038 = vmatpush3.bf16.msra.mxu1 %v3321_v32  ;;  %v1294_v32 = vld [vmem:[#allocation7 + $0x68] sm:$0xff] }
 0x13c   : > { %1049 = vmatpush1.bf16.msra.mxu0 %v3322_v33  ;;  %3039 = vmatprep.subr.bf16.mxu1 %v3325_v35  ;;  %v3173_v33 = vpack.c.bf16 %v1294_v32, %v1293_v31 }
 0x13d   : > { %1050 = vmatprep.subr.bf16.mxu0 %v3323_v34  ;;  %v1295_v34 = vld [vmem:[#allocation7 + $0x70] sm:$0xff] }
 0x13f   : > { %3040 = vmatpush3.bf16.msra.mxu1 %v3325_v35  ;;  %v1296_v35 = vld [vmem:[#allocation7 + $0x78] sm:$0xff] }
 0x140   : > { %1051 = vmatpush1.bf16.msra.mxu0 %v3326_v36  ;;  %3041 = vmatprep.subr.bf16.mxu1 %v3329_v38  ;;  %v3177_v36 = vpack.c.bf16 %v1296_v35, %v1295_v34 }
 0x141   : > { %1052 = vmatprep.subr.bf16.mxu0 %v3327_v37  ;;  %v1142_v37 = vld [vmem:[#allocation5] sm:$0xff] }
 0x143   : > { %3042 = vmatpush3.bf16.msra.mxu1 %v3329_v38  ;;  %v1146_v38 = vld [vmem:[#allocation5 + $0x20] sm:$0xff] }
 0x144   : > { %1053 = vmatpush1.bf16.msra.mxu0 %v3330_v40  ;;  %3043 = vmatprep.subr.bf16.mxu1 %v3333_v42  ;;  %v1150_v40 = vld [vmem:[#allocation5 + $0x40] sm:$0xff] }
 0x145   : > { %1054 = vmatprep.subr.bf16.mxu0 %v3331_v41 }
 0x147   : > { %3044 = vmatpush3.bf16.msra.mxu1 %v3333_v42  ;;  %v1154_v42 = vld [vmem:[#allocation5 + $0x60] sm:$0xff] }
 0x148   : > { %1055 = vmatpush1.bf16.msra.mxu0 %v3334_v43  ;;  %3045 = vmatprep.subr.bf16.mxu1 %v3335_v44  ;;  %v1143_v43 = vld [vmem:[#allocation5 + $0x8] sm:$0xff] }
 0x14b   : > { %3046 = vmatpush3.bf16.msra.mxu1 %v3335_v44  ;;  %v1147_v44 = vld [vmem:[#allocation5 + $0x28] sm:$0xff] }
 0x14c   : > { %3150 = vmatprep.subr.bf16.mxu1 %v3149_v47 }
 0x1b7   : > { %v814_v8 = vpop.xlane.xlu0 %813  ;;  %v818_v9 = vpop.xlane.xlu1 %817 }
 0x1b8   : > { %v822_v10 = vmul.f32 0.0078125, %v814_v8  ;;  %v824_v11 = vmul.f32 0.0078125, %v818_v9 }
 0x1ba   : > { %v4288_v12 = vsub.f32 %v807_v0, %v822_v10  ;;  %v4290_v13 = vsub.f32 %v809_v1, %v824_v11 }
 0x1bb   : > { %v816_v14 = vpop.xlane.xlu0 %815  ;;  %v820_v15 = vpop.xlane.xlu1 %819 }
 0x1bc   : > { %v823_v16 = vmul.f32 0.0078125, %v816_v14  ;;  %v830_v17 = vmul.f32 %v4288_v12, %v4288_v12  ;;  %v825_v18 = vmul.f32 0.0078125, %v820_v15  ;;  %v832_v21 = vmul.f32 %v4290_v13, %v4290_v13  ;;  %v1283_v14 = vld [vmem:[#allocation7 + $0x10] sm:$0xff]  ;;  %v1284_v15 = vld [vmem:[#allocation7 + $0x18] sm:$0xff] }
 0x1be   : > { %v4294_v19 = vsub.f32 %v808_v2, %v823_v16  ;;  %834 = vadd.xlane.f32.xlu0 %v830_v17  ;;  %v4296_v20 = vsub.f32 %v810_v3, %v825_v18  ;;  %v2803_v3 = vld [vmem:[%s4858_s2] ss:$0 sm:$0xff] }
 0x1c0   : > { %v831_v22 = vmul.f32 %v4294_v19, %v4294_v19  ;;  %v833_v23 = vmul.f32 %v4296_v20, %v4296_v20 }
 0x1c2   : > { %838 = vadd.xlane.f32.xlu0 %v832_v21  ;;  %836 = vadd.xlane.f32.xlu1 %v831_v22  ;;  %v1286_v21 = vld [vmem:[#allocation7 + $0x28] sm:$0xff] }
 0x1c6   : > { %840 = vadd.xlane.f32.xlu1 %v833_v23  ;;  %v1288_v23 = vld [vmem:[#allocation7 + $0x38] sm:$0xff] }
 0x24b   : > { %v835_v48 = vpop.xlane.xlu0 %834 }
 0x24c   : > { %v842_v49 = vmul.f32 0.0078125, %v835_v48  ;;  %v1144_v48 = vld [vmem:[#allocation5 + $0x10] sm:$0xff] }
 0x24e   : > { %v846_v50 = vadd.f32 1e-05, %v842_v49 }
 0x24f   : > { %v837_v51 = vpop.xlane.xlu1 %836  ;;  %v839_v52 = vpop.xlane.xlu0 %838 }
 0x250   : > { %3424 = vrsqrt.f32 %v846_v50  ;;  %v843_v53 = vmul.f32 0.0078125, %v837_v51  ;;  %v844_v54 = vmul.f32 0.0078125, %v839_v52  ;;  %v1148_v51 = vld [vmem:[#allocation5 + $0x30] sm:$0xff] }
 0x251   : > { %v1152_v52 = vld [vmem:[#allocation5 + $0x50] sm:$0xff] }
 0x252   : > { %v847_v55 = vadd.f32 1e-05, %v843_v53  ;;  %v848_v56 = vadd.f32 1e-05, %v844_v54  ;;  %v1156_v53 = vld [vmem:[#allocation5 + $0x70] sm:$0xff] }
 0x253   : > { %v841_v57 = vpop.xlane.xlu1 %840 }
 0x254   : > { %3426 = vrsqrt.f32 %v847_v55  ;;  %v845_v58 = vmul.f32 0.0078125, %v841_v57 }
 0x255   : > { %3428 = vrsqrt.f32 %v848_v56 }
 0x256   : > { %v849_v59 = vadd.f32 1e-05, %v845_v58 }
 0x258   : > { %3430 = vrsqrt.f32 %v849_v59  ;;  %v1145_v59 = vld [vmem:[#allocation5 + $0x18] sm:$0xff] }
 0x25a   : > { %v3425_v60 = vpop.eup %3424 }
 0x25b   : > { %v854_v61 = vmul.f32 %v3425_v60, %v4288_v12 }
 0x25d   : > { %v864_v2 = vmul.f32 %v2802_v62, %v854_v61 }
 0x25e   : > { %v3427_v63 = vpop.eup %3426 }
 0x25f   : > { %v3429_v0 = vpop.eup %3428  ;;  %v855_v1 = vmul.f32 %v3427_v63, %v4294_v19  ;;  %v874_v7 = vadd.f32 %v2803_v3, %v864_v2  ;;  %v3153_v19 = vpack.c.bf16 %v1284_v15, %v1283_v14  ;;  %v1153_v2 = vld [vmem:[#allocation5 + $0x58] sm:$0xff] }
 0x260   : > { %v856_v4 = vmul.f32 %v3429_v0, %v4290_v13  ;;  %v1285_v13 = vld [vmem:[#allocation7 + $0x20] sm:$0xff] }
 0x261   : > { %v865_v5 = vmul.f32 %v2802_v62, %v855_v1  ;;  %v3157_v22 = vpack.c.bf16 %v1286_v21, %v1285_v13  ;;  %v1149_v1 = vld [vmem:[#allocation5 + $0x38] sm:$0xff] }
 0x262   : > { %v3431_v6 = vpop.eup %3430  ;;  %v866_v10 = vmul.f32 %v2802_v62, %v856_v4 }
 0x263   : > { %v875_v8 = vadd.f32 %v2803_v3, %v865_v5  ;;  %v857_v9 = vmul.f32 %v3431_v6, %v4296_v20  ;;  %v1287_v20 = vld [vmem:[#allocation7 + $0x30] sm:$0xff] }
 0x264   : > { %v876_v16 = vadd.f32 %v2803_v3, %v866_v10  ;;  %v3161_v24 = vpack.c.bf16 %v1288_v23, %v1287_v20 }
 0x265   : > { %v878_v11 = vpack.c.bf16 %v875_v8, %v874_v7  ;;  %v867_v12 = vmul.f32 %v2802_v62, %v857_v9 }
 0x267   : > { %1073 = vmatmul.mubr.bf16.vlgmr.msra.gmra.mrb[0].mxu0 %v878_v11  ;;  %3047 = vmatprep.mubr.bf16.mxu1 %v878_v11  ;;  %v877_v17 = vadd.f32 %v2803_v3, %v867_v12  ;;  %v1157_v3 = vld [vmem:[#allocation5 + $0x78] sm:$0xff] }
 0x268   : > { %1082 = vmatprep.mubr.bf16.mxu0 %v3822_v39 }
 0x269   : > { %v879_v18 = vpack.c.bf16 %v877_v17, %v876_v16 }
 0x26b   : > { %3048 = vmatmul.mubr.bf16.vlgmr.msra.gmra.mrb[0].mxu1 %v879_v18 }
 0x26c   : > { %3152 = vmatpush3.bf16.msra.mxu1 %v3149_v47  ;;  %v1155_v47 = vld [vmem:[#allocation5 + $0x68] sm:$0xff] }
 0x26d   : > { %3154 = vmatprep.subr.bf16.mxu1 %v3153_v19 }
 0x26f   : > { %1083 = vmatmul.mubr.bf16.gmra.mrb[4].mxu0 %v879_v18 }
 0x270   : > { %3156 = vmatpush3.bf16.msra.mxu1 %v3153_v19 }
 0x271   : > { %3158 = vmatprep.subr.bf16.mxu1 %v3157_v22 }
 0x274   : > { %3160 = vmatpush3.bf16.msra.mxu1 %v3157_v22 }
 0x275   : > { %3162 = vmatprep.subr.bf16.mxu1 %v3161_v24 }
 0x278   : > { %3164 = vmatpush3.bf16.msra.mxu1 %v3161_v24 }
 0x279   : > { %3166 = vmatprep.subr.bf16.mxu1 %v3165_v27 }
 0x27c   : > { %3168 = vmatpush3.bf16.msra.mxu1 %v3165_v27 }
 0x27d   : > { %3170 = vmatprep.subr.bf16.mxu1 %v3169_v30 }
 0x280   : > { %3172 = vmatpush3.bf16.msra.mxu1 %v3169_v30 }
 0x281   : > { %3174 = vmatprep.subr.bf16.mxu1 %v3173_v33 }
 0x284   : > { %3176 = vmatpush3.bf16.msra.mxu1 %v3173_v33 }
 0x285   : > { %3178 = vmatprep.subr.bf16.mxu1 %v3177_v36 }
 0x288   : > { %3180 = vmatpush3.bf16.msra.mxu1 %v3177_v36 }
 0x33a   : > { %v1074_v41 = vpop.f32.mrb[0].mxu0 }
 0x33b   : > { %v1076_v45 = vpop.f32.mrb[1].mxu0 }
 0x33c   : > { %v1158_v49 = vmul.f32 %v1142_v37, %v1076_v45  ;;  %v1078_v50 = vpop.f32.mrb[2].mxu0  ;;  %v1162_v54 = vmul.f32 %v1146_v38, %v1076_v45  ;;  %v1166_v55 = vmul.f32 %v1150_v40, %v1076_v45  ;;  %v1170_v56 = vmul.f32 %v1154_v42, %v1076_v45 }
 0x33d   : > { %v1206_v57 = vpack.c.bf16 %v1078_v50, %v1074_v41  ;;  %v1080_v58 = vpop.f32.mrb[3].mxu0 }
 0x33e   : > { %v1159_v60 = vmul.f32 %v1143_v43, %v1080_v58  ;;  %v1163_v61 = vmul.f32 %v1147_v44, %v1080_v58  ;;  %v1167_v62 = vmul.f32 %v1151_v46, %v1080_v58  ;;  %v1171_v63 = vmul.f32 %v1155_v47, %v1080_v58  ;;  %v3049_v0 = vpop.f32.mrb[0].mxu1 }
 0x33f   : > { %v1184_v4 = vmul.f32 %v3049_v0, %v1144_v48  ;;  %v1188_v5 = vmul.f32 %v3049_v0, %v1148_v51  ;;  %v1192_v6 = vmul.f32 %v3049_v0, %v1152_v52  ;;  %v1196_v7 = vmul.f32 %v3049_v0, %v1156_v53  ;;  %v1127_v8 = vpop.f32.mrb[1].mxu1  ;;  %3067 = vmatprep.mubr.bf16.mxu0 %v1206_v57 }
 0x340   : > { %v1182_v9 = vmul.f32 %v1142_v37, %v1127_v8  ;;  %v1186_v10 = vmul.f32 %v1146_v38, %v1127_v8  ;;  %v1190_v11 = vmul.f32 %v1150_v40, %v1127_v8  ;;  %v1194_v12 = vmul.f32 %v1154_v42, %v1127_v8  ;;  %v3050_v14 = vpop.f32.mrb[2].mxu1 }
 0x341   : > { %v1185_v15 = vmul.f32 %v3050_v14, %v1145_v59  ;;  %v1189_v16 = vmul.f32 %v3050_v14, %v1149_v1  ;;  %v1193_v17 = vmul.f32 %v3050_v14, %v1153_v2  ;;  %v1197_v18 = vmul.f32 %v3050_v14, %v1157_v3  ;;  %v1130_v19 = vpop.f32.mrb[3].mxu1 }
 0x342   : > { %v1183_v13 = vmul.f32 %v1143_v43, %v1130_v19  ;;  %v1187_v21 = vmul.f32 %v1147_v44, %v1130_v19  ;;  %v1191_v22 = vmul.f32 %v1151_v46, %v1130_v19  ;;  %v1195_v20 = vmul.f32 %v1155_v47, %v1130_v19  ;;  %v1084_v23 = vpop.f32.mrb[4].mxu0  ;;  %v3337_v19 = vld [vmem:[%s4226_s16 + $0x8] sm:$0xff]  }
 0x343   : > { %v1174_v24 = vpack.c.bf16 %v1159_v60, %v1158_v49  ;;  %v1086_v25 = vpop.f32.mrb[5].mxu0  ;;  %v1176_v26 = vpack.c.bf16 %v1163_v61, %v1162_v54  ;;  %v1178_v27 = vpack.c.bf16 %v1167_v62, %v1166_v55  ;;  %v1180_v28 = vpack.c.bf16 %v1171_v63, %v1170_v56  ;;  %v1209_v56 = vld [vmem:[#allocation2 + $0x8] sm:$0xff]  ;;  %v1211_v62 = vld [vmem:[#allocation2 + $0x18] sm:$0xff] }
 0x344   : > { %v1160_v29 = vmul.f32 %v1144_v48, %v1086_v25  ;;  %v1164_v30 = vmul.f32 %v1148_v51, %v1086_v25  ;;  %v1168_v31 = vmul.f32 %v1152_v52, %v1086_v25  ;;  %v1172_v32 = vmul.f32 %v1156_v53, %v1086_v25  ;;  %v1088_v33 = vpop.f32.mrb[6].mxu0  ;;  %v1208_v53 = vld [vmem:[#allocation2] sm:$0xff] }
 0x345   : > { %3051 = vmatprep.subr.bf16.mxu0 %v1174_v24  ;;  %v1207_v34 = vpack.c.bf16 %v1088_v33, %v1084_v23  ;;  %v1090_v35 = vpop.f32.mrb[7].mxu0  ;;  %v4340_v36 = vpack.c.bf16 %v1183_v13, %v1182_v9  ;;  %v4342_v37 = vpack.c.bf16 %v1185_v15, %v1184_v4  ;;  %v4344_v38 = vpack.c.bf16 %v1187_v21, %v1186_v10  ;;  %v3338_v13 = vld [vmem:[%s4226_s16 + $0x10] sm:$0xff]   ;;  %v3339_v21 = vld [vmem:[%s4226_s16 + $0x18] sm:$0xff]  }
 0x346   : > { %3052 = vmatpush3.bf16.xpose.msra.mxu0 %v1174_v24  ;;  %v1161_v40 = vmul.f32 %v1145_v59, %v1090_v35  ;;  %v1165_v41 = vmul.f32 %v1149_v1, %v1090_v35  ;;  %v1169_v42 = vmul.f32 %v1153_v2, %v1090_v35  ;;  %v1173_v43 = vmul.f32 %v1157_v3, %v1090_v35  ;;  %v1210_v59 = vld [vmem:[#allocation2 + $0x10] sm:$0xff] }
 0x347   : > { %3109 = vmatprep.subr.bf16.mxu1 %v4340_v36  ;;  %v4347_v44 = vpack.c.bf16 %v1189_v16, %v1188_v5  ;;  %v4349_v45 = vpack.c.bf16 %v1191_v22, %v1190_v11  ;;  %v4351_v46 = vpack.c.bf16 %v1193_v17, %v1192_v6  ;;  %v4353_v47 = vpack.c.bf16 %v1195_v20, %v1194_v12  ;;  %v3340_v22 = vld [vmem:[%s4226_s16 + $0x20] sm:$0xff]   ;;  %v3341_v20 = vld [vmem:[%s4226_s16 + $0x28] sm:$0xff]   ;;  %v3342_v23 = vld [vmem:[%s4226_s16 + $0x30] sm:$0xff]  }
 0x348   : > { %v1175_v48 = vpack.c.bf16 %v1161_v40, %v1160_v29  ;;  %v1177_v49 = vpack.c.bf16 %v1165_v41, %v1164_v30  ;;  %v1179_v50 = vpack.c.bf16 %v1169_v42, %v1168_v31  ;;  %v1181_v51 = vpack.c.bf16 %v1173_v43, %v1172_v32 }
 0x349   : > { %v4355_v52 = vpack.c.bf16 %v1197_v18, %v1196_v7  ;;  %v3336_v18 = vld [vmem:[%s4226_s16] sm:$0xff]  }
 0x34a   : > { %3053 = vmatprep.subr.bf16.mxu0 %v1175_v48 }
 0x34e   : > { %3054 = vmatpush3.bf16.xpose.msra.mxu0 %v1175_v48 }
 0x34f   : > { %3055 = vmatprep.subr.bf16.mxu0 %v1176_v26 }
 0x356   : > { %3056 = vmatpush3.bf16.xpose.msra.mxu0 %v1176_v26 }
 0x357   : > { %3057 = vmatprep.subr.bf16.mxu0 %v1177_v49 }
 0x35e   : > { %3058 = vmatpush3.bf16.xpose.msra.mxu0 %v1177_v49 }
 0x35f   : > { %3059 = vmatprep.subr.bf16.mxu0 %v1178_v27 }
 0x366   : > { %3060 = vmatpush3.bf16.xpose.msra.mxu0 %v1178_v27 }
 0x367   : > { %3061 = vmatprep.subr.bf16.mxu0 %v1179_v50 }
 0x36e   : > { %3062 = vmatpush3.bf16.xpose.msra.mxu0 %v1179_v50 }
 0x36f   : > { %3063 = vmatprep.subr.bf16.mxu0 %v1180_v28 }
 0x376   : > { %3064 = vmatpush3.bf16.xpose.msra.mxu0 %v1180_v28 }
 0x377   : > { %3065 = vmatprep.subr.bf16.mxu0 %v1181_v51 }
 0x37e   : > { %3066 = vmatpush3.bf16.xpose.msra.mxu0 %v1181_v51 }
 0x37f   : > { %3129 = vmatprep.subr.bf16.mxu0 %v3336_v18 }
 0x385   : > { %3068 = vmatmul.mubr.bf16.vlgmr.msra.gmra.mrb[8].mxu0 %v1207_v34 }
 0x386   : > { %3130 = vmatpush3.bf16.msra.mxu0 %v3336_v18 }
 0x387   : > { %3131 = vmatprep.subr.bf16.mxu0 %v3337_v19 }
 0x38a   : > { %3132 = vmatpush3.bf16.msra.mxu0 %v3337_v19 }
 0x38b   : > { %3133 = vmatprep.subr.bf16.mxu0 %v3338_v13 }
 0x38e   : > { %3134 = vmatpush3.bf16.msra.mxu0 %v3338_v13 }
 0x38f   : > { %3135 = vmatprep.subr.bf16.mxu0 %v3339_v21 }
 0x392   : > { %3136 = vmatpush3.bf16.msra.mxu0 %v3339_v21 }
 0x393   : > { %3137 = vmatprep.subr.bf16.mxu0 %v3340_v22 }
 0x396   : > { %3138 = vmatpush3.bf16.msra.mxu0 %v3340_v22 }
 0x397   : > { %3139 = vmatprep.subr.bf16.mxu0 %v3341_v20 }
 0x39a   : > { %3140 = vmatpush3.bf16.msra.mxu0 %v3341_v20 }
 0x39b   : > { %3141 = vmatprep.subr.bf16.mxu0 %v3342_v23 }
 0x39e   : > { %3142 = vmatpush3.bf16.msra.mxu0 %v3342_v23  ;;  %v3358_v23 = vld [vmem:[%s4228_s6 + $0x44] ss:$16 sps:$4 sm:$0xff]  }
 0x458   : > { %v3069_v54 = vpop.f32.mrb[8].mxu0 }
 0x459   : > { %v1246_v55 = vpop.f32.mrb[9].mxu0  ;;  %v1255_v63 = vadd.f32 %v3069_v54, %v1210_v59  ;;  %v3490_v59 = vld [vmem:[#allocation14 + $0x10] sm:$0xff] }
 0x45a   : > { %v1247_v57 = vadd.f32 %v1246_v55, %v1208_v53  ;;  %v3070_v58 = vpop.f32.mrb[10].mxu0  ;;  %v3488_v53 = vld [vmem:[#allocation14] sm:$0xff] }
 0x45b   : > { %v1249_v60 = vpop.f32.mrb[11].mxu0  ;;  %v1258_v0 = vadd.f32 %v3070_v58, %v1211_v62 }
 0x45c   : > { %v1250_v61 = vadd.f32 %v1249_v60, %v1209_v56  ;;  %1261 = vmax.xlane.f32.xlu0 %v1247_v57 }
 0x45e   : > { %1263 = vmax.xlane.f32.xlu1 %v1250_v61 }
 0x460   : > { %1265 = vmax.xlane.f32.xlu0 %v1255_v63 }
 0x462   : > { %1267 = vmax.xlane.f32.xlu1 %v1258_v0 }
 0x4e9   : > { %v1262_v1 = vpop.xlane.xlu0 %1261 }
 0x4ea   : > { %v1269_v2 = vsub.f32 %v1247_v57, %v1262_v1  ;;  %v3489_v57 = vld [vmem:[#allocation14 + $0x8] sm:$0xff] }
 0x4eb   : > { %v1264_v3 = vpop.xlane.xlu1 %1263  ;;  %v3347_v1 = vld [vmem:[%s4228_s6 + $0x8] ss:$16 sps:$4 sm:$0xff]  }
 0x4ec   : > { %v1273_v4 = vmul.f32 1.442695, %v1269_v2  ;;  %v1270_v5 = vsub.f32 %v1250_v61, %v1264_v3  ;;  %v3491_v61 = vld [vmem:[#allocation14 + $0x18] sm:$0xff]  ;;  %v3352_v3 = vld [vmem:[%s4228_s6 + $0x24] ss:$16 sps:$4 sm:$0xff]  }
 0x4ed   : > { %v1266_v6 = vpop.xlane.xlu0 %1265  ;;  %v3349_v2 = vld [vmem:[%s4228_s6 + $0xc] ss:$16 sps:$4 sm:$0xff]  }
 0x4ee   : > { %3432 = vpow2.f32 %v1273_v4  ;;  %v1275_v7 = vmul.f32 1.442695, %v1270_v5  ;;  %v1271_v8 = vsub.f32 %v1255_v63, %v1266_v6  ;;  %v3344_v63 = vld [vmem:[%s4228_s6] ss:$16 sps:$4 sm:$0xff]   ;;  %v3355_v4 = vld [vmem:[%s4228_s6 + $0x2c] ss:$16 sps:$4 sm:$0xff]  }
 0x4ef   : > { %v1268_v9 = vpop.xlane.xlu1 %1267  ;;  %v3350_v5 = vld [vmem:[%s4228_s6 + $0x20] ss:$16 sps:$4 sm:$0xff]   ;;  %v3353_v6 = vld [vmem:[%s4228_s6 + $0x28] ss:$16 sps:$4 sm:$0xff]  }
 0x4f0   : > { %3434 = vpow2.f32 %v1275_v7  ;;  %v1277_v10 = vmul.f32 1.442695, %v1271_v8  ;;  %v1272_v11 = vsub.f32 %v1258_v0, %v1268_v9  ;;  %v3346_v0 = vld [vmem:[%s4228_s6 + $0x4] ss:$16 sps:$4 sm:$0xff]  }
 0x4f2   : > { %3436 = vpow2.f32 %v1277_v10  ;;  %v1279_v12 = vmul.f32 1.442695, %v1272_v11 }
 0x4f4   : > { %3438 = vpow2.f32 %v1279_v12 }
 0x4f8   : > { %v3433_v14 = vpop.eup %3432 }
 0x4f9   : > { %3103 = vmatprep.mubr.f32.mxu1 %v3433_v14 }
 0x4fa   : > { %v3435_v15 = vpop.eup %3434 }
 0x4fb   : > { %3104 = vmatmul.mubr.f32.vlgmr.msra.gmra.mrb[4].mxu1 %v3435_v15 }
 0x4fc   : > { %v3437_v16 = vpop.eup %3436  ;;  %3110 = vmatpush3.bf16.msra.mxu1 %v4340_v36 }
 0x4fd   : > { %3111 = vmatprep.subr.bf16.mxu1 %v4342_v37  ;;  %3106 = vmatprep.mubr.f32.mxu1 %v3437_v16 }
 0x4fe   : > { %v3439_v17 = vpop.eup %3438 }
 0x4ff   : > { %3107 = vmatmul.mubr.f32.gmra.mrb[6].mxu1 %v3439_v17 }
 0x500   : > { %3112 = vmatpush3.bf16.msra.mxu1 %v4342_v37 }
 0x501   : > { %3113 = vmatprep.subr.bf16.mxu1 %v4344_v38 }
 0x504   : > { %3114 = vmatpush3.bf16.msra.mxu1 %v4344_v38  ;;  %v3343_v38 = vld [vmem:[%s4226_s16 + $0x38] sm:$0xff]  }
 0x505   : > { %3115 = vmatprep.subr.bf16.mxu1 %v4347_v44  ;;  %3143 = vmatprep.subr.bf16.mxu0 %v3343_v38 }
 0x506   : > { %3144 = vmatpush3.bf16.msra.mxu0 %v3343_v38  ;;  %v3377_v38 = vld [vmem:[%s4228_s6 + $0xa8] ss:$16 sps:$4 sm:$0xff]  }
 0x507   : > { %1902 = vmatprep.subr.bf16.mxu0 %v3349_v2 }
 0x508   : > { %3116 = vmatpush3.bf16.msra.mxu1 %v4347_v44 }
 0x509   : > { %3117 = vmatprep.subr.bf16.mxu1 %v4349_v45 }
 0x50c   : > { %3118 = vmatpush3.bf16.msra.mxu1 %v4349_v45 }
 0x50d   : > { %3119 = vmatprep.subr.bf16.mxu1 %v4351_v46 }
 0x510   : > { %3120 = vmatpush3.bf16.msra.mxu1 %v4351_v46  ;;  %v2828_v46 = vld [vmem:[%s774_s15] ss:$0 sm:$0xff] }
 0x511   : > { %3121 = vmatprep.subr.bf16.mxu1 %v4353_v47 }
 0x514   : > { %3122 = vmatpush3.bf16.msra.mxu1 %v4353_v47 }
 0x515   : > { %3123 = vmatprep.subr.bf16.mxu1 %v4355_v52 }
 0x518   : > { %3124 = vmatpush3.bf16.msra.mxu1 %v4355_v52 }
 0x519   : > { %1849 = vmatprep.subr.bf16.mxu1 %v3346_v0 }
 0x5ce   : > { %v3105_v24 = vpop.f32.mrb[4].mxu1 }
 0x5cf   : > { %3440 = vrcp.f32 %v3105_v24  ;;  %v1363_v25 = vpop.f32.mrb[5].mxu1  ;;  %v3361_v24 = vld [vmem:[%s4228_s6 + $0x4c] ss:$16 sps:$4 sm:$0xff]  }
 0x5d0   : > { %3442 = vrcp.f32 %v1363_v25  ;;  %v3356_v25 = vld [vmem:[%s4228_s6 + $0x40] ss:$16 sps:$4 sm:$0xff]  }
 0x5d2   : > { %v3108_v26 = vpop.f32.mrb[6].mxu1 }
 0x5d3   : > { %3444 = vrcp.f32 %v3108_v26  ;;  %v1373_v27 = vpop.f32.mrb[7].mxu1  ;;  %v3359_v26 = vld [vmem:[%s4228_s6 + $0x48] ss:$16 sps:$4 sm:$0xff]  }
 0x5d4   : > { %3446 = vrcp.f32 %v1373_v27  ;;  %v3364_v27 = vld [vmem:[%s4228_s6 + $0x64] ss:$16 sps:$4 sm:$0xff]  }
 0x5d9   : > { %v3441_v28 = vpop.eup %3440 }
 0x5da   : > { %v3443_v29 = vpop.eup %3442  ;;  %v1387_v30 = vmul.f32 %v3441_v28, %v3435_v15  ;;  %v3367_v28 = vld [vmem:[%s4228_s6 + $0x6c] ss:$16 sps:$4 sm:$0xff]  }
 0x5db   : > { %v1386_v31 = vmul.f32 %v3443_v29, %v3433_v14  ;;  %v3362_v29 = vld [vmem:[%s4228_s6 + $0x60] ss:$16 sps:$4 sm:$0xff]  }
 0x5dd   : > { %v3445_v32 = vpop.eup %3444  ;;  %v1390_v33 = vpack.c.bf16 %v1387_v30, %v1386_v31  ;;  %v3365_v30 = vld [vmem:[%s4228_s6 + $0x68] ss:$16 sps:$4 sm:$0xff]   ;;  %v3370_v31 = vld [vmem:[%s4228_s6 + $0x84] ss:$16 sps:$4 sm:$0xff]  }
 0x5de   : > { %v3447_v34 = vpop.eup %3446  ;;  %v1389_v35 = vmul.f32 %v3445_v32, %v3439_v17  ;;  %v3373_v32 = vld [vmem:[%s4228_s6 + $0x8c] ss:$16 sps:$4 sm:$0xff]  }
 0x5df   : > { %v1388_v36 = vmul.f32 %v3447_v34, %v3437_v16  ;;  %3125 = vmatprep.mubr.bf16.mxu1 %v1390_v33  ;;  %v3368_v33 = vld [vmem:[%s4228_s6 + $0x80] ss:$16 sps:$4 sm:$0xff]   ;;  %v3371_v34 = vld [vmem:[%s4228_s6 + $0x88] ss:$16 sps:$4 sm:$0xff]  }
 0x5e1   : > { %v1391_v37 = vpack.c.bf16 %v1389_v35, %v1388_v36  ;;  %v3376_v35 = vld [vmem:[%s4228_s6 + $0xa4] ss:$16 sps:$4 sm:$0xff]   ;;  %v3379_v36 = vld [vmem:[%s4228_s6 + $0xac] ss:$16 sps:$4 sm:$0xff]  }
 0x5e3   : > { %3126 = vmatmul.mubr.bf16.vlgmr.msra.gmra.mrb[8].mxu1 %v1391_v37  ;;  %v3374_v37 = vld [vmem:[%s4228_s6 + $0xa0] ss:$16 sps:$4 sm:$0xff]  }
 0x5e4   : > { %1881 = vmatprep.mubr.bf16.mxu1 %v3822_v39  ;;  %1850 = vmatpush1.bf16.msra.mxu1 %v3344_v63 }
 0x5e5   : > { %1851 = vmatprep.subr.bf16.mxu1 %v3352_v3 }
 0x5e8   : > { %1852 = vmatpush1.bf16.msra.mxu1 %v3350_v5 }
 0x5e9   : > { %1853 = vmatprep.subr.bf16.mxu1 %v3358_v23  ;;  %v4471_v23 = vld [vmem:[%s4268_s23 + $0x80] sm:$0xff]  }
 0x5ec   : > { %1854 = vmatpush1.bf16.msra.mxu1 %v3356_v25  ;;  %v4477_v25 = vld [vmem:[%s4268_s23 + $0xc8] sm:$0xff]  }
 0x5ed   : > { %1855 = vmatprep.subr.bf16.mxu1 %v3364_v27  ;;  %v3400_v27 = vld [vmem:[%s4268_s23 + $0x50] sm:$0xff]  }
 0x5f0   : > { %1856 = vmatpush1.bf16.msra.mxu1 %v3362_v29  ;;  %v4487_v29 = vld [vmem:[%s4268_s23 + $0xd0] sm:$0xff]  }
 0x5f1   : > { %1857 = vmatprep.subr.bf16.mxu1 %v3370_v31  ;;  %v3404_v31 = vld [vmem:[%s4268_s23 + $0x58] sm:$0xff]  }
 0x5f4   : > { %1858 = vmatpush1.bf16.msra.mxu1 %v3368_v33  ;;  %v4497_v33 = vld [vmem:[%s4268_s23 + $0xd8] sm:$0xff]  }
 0x5f5   : > { %1859 = vmatprep.subr.bf16.mxu1 %v3376_v35  ;;  %v3408_v35 = vld [vmem:[%s4268_s23 + $0x60] sm:$0xff]  }
 0x5f8   : > { %1860 = vmatpush1.bf16.msra.mxu1 %v3374_v37  ;;  %v4507_v37 = vld [vmem:[%s4268_s23 + $0xe0] sm:$0xff]  }
 0x6b6   : > { %v3127_v40 = vpop.f32.mrb[8].mxu1 }
 0x6b7   : > { %v1426_v41 = vpop.f32.mrb[9].mxu1 }
 0x6b8   : > { %v3128_v42 = vpop.f32.mrb[10].mxu1 }
 0x6b9   : > { %v1442_v43 = vpack.c.bf16 %v3128_v42, %v3127_v40  ;;  %v1429_v44 = vpop.f32.mrb[11].mxu1  ;;  %v3380_v40 = vld [vmem:[%s4228_s6 + $0xc0] ss:$16 sps:$4 sm:$0xff]   ;;  %v3383_v42 = vld [vmem:[%s4228_s6 + $0xc8] ss:$16 sps:$4 sm:$0xff]  }
 0x6ba   : > { %v1441_v45 = vpack.c.bf16 %v1429_v44, %v1426_v41  ;;  %v3382_v41 = vld [vmem:[%s4228_s6 + $0xc4] ss:$16 sps:$4 sm:$0xff]  }
 0x6bb   : > { %v3388_v44 = vld [vmem:[%s4228_s6 + $0xe4] ss:$16 sps:$4 sm:$0xff]   ;;  %1861 = vmatprep.subr.bf16.mxu1 %v3382_v41  ;;  %v3413_v41 = vld [vmem:[%s4268_s23 + $0x28] sm:$0xff]  }
 0x6bc   : > { %3145 = vmatprep.mubr.bf16.mxu0 %v1441_v45  ;;  %v3391_v45 = vld [vmem:[%s4228_s6 + $0xec] ss:$16 sps:$4 sm:$0xff]   ;;  %1862 = vmatpush1.bf16.msra.mxu1 %v3380_v40 }
 0x6bd   : > { %3146 = vmatmul.mubr.bf16.vlgmr.msra.gmra.mrb[12].mxu0 %v1442_v43  ;;  %v3385_v43 = vld [vmem:[%s4228_s6 + $0xcc] ss:$16 sps:$4 sm:$0xff]   ;;  %1863 = vmatprep.subr.bf16.mxu1 %v3388_v44  ;;  %v3416_v44 = vld [vmem:[%s4268_s23 + $0x70] sm:$0xff]  }
 0x6be   : > { %1934 = vmatprep.mubr.bf16.mxu0 %v3822_v39  ;;  %1903 = vmatpush1.bf16.msra.mxu0 %v3347_v1  ;;  %v2837_v1 = vld [vmem:[%s777_s27] ss:$0 sm:$0xff]  ;;  %v3412_v40 = vld [vmem:[%s4268_s23 + $0x68] sm:$0xff]  }
 0x6bf   : > { %1904 = vmatprep.subr.bf16.mxu0 %v3355_v4 }
 0x6c2   : > { %1905 = vmatpush1.bf16.msra.mxu0 %v3353_v6 }
 0x6c3   : > { %1906 = vmatprep.subr.bf16.mxu0 %v3361_v24  ;;  %v3397_v24 = vld [vmem:[%s4268_s23 + $0x8] sm:$0xff]  }
 0x6c6   : > { %1907 = vmatpush1.bf16.msra.mxu0 %v3359_v26  ;;  %v4480_v26 = vld [vmem:[%s4268_s23 + $0x88] sm:$0xff]  }
 0x6c7   : > { %1908 = vmatprep.subr.bf16.mxu0 %v3367_v28  ;;  %v3401_v28 = vld [vmem:[%s4268_s23 + $0x10] sm:$0xff]  }
 0x6ca   : > { %1909 = vmatpush1.bf16.msra.mxu0 %v3365_v30  ;;  %v4491_v30 = vld [vmem:[%s4268_s23 + $0x90] sm:$0xff]  }
 0x6cb   : > { %1910 = vmatprep.subr.bf16.mxu0 %v3373_v32  ;;  %v3405_v32 = vld [vmem:[%s4268_s23 + $0x18] sm:$0xff]  }
 0x6ce   : > { %1911 = vmatpush1.bf16.msra.mxu0 %v3371_v34  ;;  %v4500_v34 = vld [vmem:[%s4268_s23 + $0x98] sm:$0xff]  }
 0x6cf   : > { %1912 = vmatprep.subr.bf16.mxu0 %v3379_v36  ;;  %v3409_v36 = vld [vmem:[%s4268_s23 + $0x20] sm:$0xff]  }
 0x6d2   : > { %1913 = vmatpush1.bf16.msra.mxu0 %v3377_v38  ;;  %v4510_v38 = vld [vmem:[%s4268_s23 + $0xa0] sm:$0xff]  }
 0x6d3   : > { %1914 = vmatprep.subr.bf16.mxu0 %v3385_v43  ;;  %v4520_v43 = vld [vmem:[%s4268_s23 + $0xa8] sm:$0xff]  }
 0x6d6   : > { %1915 = vmatpush1.bf16.msra.mxu0 %v3383_v42  ;;  %v4517_v42 = vld [vmem:[%s4268_s23 + $0xe8] sm:$0xff]  }
 0x6d7   : > { %1916 = vmatprep.subr.bf16.mxu0 %v3391_v45  ;;  %v3417_v45 = vld [vmem:[%s4268_s23 + $0x30] sm:$0xff]  }
 0x790   : > { %v3147_v47 = vpop.f32.mrb[12].mxu0 }
 0x791   : > { %v1548_v48 = vpop.f32.mrb[13].mxu0  ;;  %v1557_v52 = vadd.f32 %v3147_v47, %v2828_v46  ;;  %v3389_v47 = vld [vmem:[%s4228_s6 + $0xe8] ss:$16 sps:$4 sm:$0xff]  }
 0x792   : > { %v1549_v49 = vadd.f32 %v2828_v46, %v1548_v48  ;;  %v3148_v50 = vpop.f32.mrb[14].mxu0  ;;  %1917 = vmatpush1.bf16.msra.mxu0 %v3389_v47  ;;  %v4530_v47 = vld [vmem:[%s4268_s23 + $0xb0] sm:$0xff]  }
 0x793   : > { %v1551_v51 = vpop.f32.mrb[15].mxu0  ;;  %v1560_v56 = vadd.f32 %v3148_v50, %v2828_v46  ;;  %v4392_v60 = vadd.f32 %v3490_v59, %v1557_v52 }
 0x794   : > { %v4387_v54 = vadd.f32 %v3488_v53, %v1549_v49  ;;  %v1552_v55 = vadd.f32 %v2828_v46, %v1551_v51  ;;  %v3386_v46 = vld [vmem:[%s4228_s6 + $0xe0] ss:$16 sps:$4 sm:$0xff]  }
 0x795   : > { %v4395_v62 = vadd.f32 %v3491_v61, %v1560_v56  ;;  %1864 = vmatpush1.bf16.msra.mxu1 %v3386_v46  ;;  %v4526_v46 = vld [vmem:[%s4268_s23 + $0xf0] sm:$0xff]  }
 0x796   : > { %v4389_v58 = vadd.f32 %v3489_v57, %v1552_v55  ;;  %1569 = vadd.xlane.f32.xlu0 %v4387_v54 }
 0x798   : > { %1571 = vadd.xlane.f32.xlu1 %v4389_v58 }
 0x79a   : > { %1573 = vadd.xlane.f32.xlu0 %v4392_v60 }
 0x79c   : > { %1575 = vadd.xlane.f32.xlu1 %v4395_v62 }
 0x823   : > { %v1570_v7 = vpop.xlane.xlu0 %1569 }
 0x824   : > { %v1577_v8 = vmul.f32 0.0078125, %v1570_v7  ;;  %v2838_v7 = vld [vmem:[%s780_s4] ss:$0 sm:$0xff] }
 0x825   : > { %v1572_v9 = vpop.xlane.xlu1 %1571 }
 0x826   : > { %v4408_v10 = vsub.f32 %v4387_v54, %v1577_v8  ;;  %v1578_v11 = vmul.f32 0.0078125, %v1572_v9 }
 0x827   : > { %v1574_v12 = vpop.xlane.xlu0 %1573 }
 0x828   : > { %v4411_v14 = vsub.f32 %v4389_v58, %v1578_v11  ;;  %v1579_v15 = vmul.f32 0.0078125, %v1574_v12  ;;  %v1585_v16 = vmul.f32 %v4408_v10, %v4408_v10 }
 0x829   : > { %v1576_v17 = vpop.xlane.xlu1 %1575 }
 0x82a   : > { %v4416_v18 = vsub.f32 %v4392_v60, %v1579_v15  ;;  %v1580_v19 = vmul.f32 0.0078125, %v1576_v17  ;;  %1589 = vadd.xlane.f32.xlu0 %v1585_v16  ;;  %v1586_v13 = vmul.f32 %v4411_v14, %v4411_v14 }
 0x82c   : > { %v4421_v21 = vsub.f32 %v4395_v62, %v1580_v19  ;;  %1591 = vadd.xlane.f32.xlu1 %v1586_v13  ;;  %v1587_v22 = vmul.f32 %v4416_v18, %v4416_v18 }
 0x82e   : > { %1593 = vadd.xlane.f32.xlu0 %v1587_v22  ;;  %v1588_v20 = vmul.f32 %v4421_v21, %v4421_v21  ;;  %v3393_v22 = vld [vmem:[%s4268_s23] sm:$0xff]  }
 0x830   : > { %1595 = vadd.xlane.f32.xlu1 %v1588_v20  ;;  %v3394_v20 = vld [vmem:[%s4268_s23 + $0xc0] sm:$0xff]  }
 0x831   : > { %3003 = vmatprep.subr.bf16.mxu0 %v3394_v20 }
 0x8b7   : > { %v1590_v48 = vpop.xlane.xlu0 %1589 }
 0x8b8   : > { %v1597_v49 = vmul.f32 0.0078125, %v1590_v48  ;;  %v3420_v48 = vld [vmem:[%s4268_s23 + $0x78] sm:$0xff]  }
 0x8b9   : > { %v1592_v50 = vpop.xlane.xlu1 %1591 }
 0x8ba   : > { %v1601_v51 = vadd.f32 1e-05, %v1597_v49  ;;  %v1598_v52 = vmul.f32 0.0078125, %v1592_v50  ;;  %v4535_v49 = vld [vmem:[%s4268_s23 + $0xf8] sm:$0xff]  }
 0x8bb   : > { %v1594_v53 = vpop.xlane.xlu0 %1593  ;;  %v3421_v50 = vld [vmem:[%s4268_s23 + $0x38] sm:$0xff]  }
 0x8bc   : > { %3448 = vrsqrt.f32 %v1601_v51  ;;  %v1602_v55 = vadd.f32 1e-05, %v1598_v52  ;;  %v1599_v56 = vmul.f32 0.0078125, %v1594_v53  ;;  %v4540_v51 = vld [vmem:[%s4268_s23 + $0xb8] sm:$0xff]   ;;  %v1669_v52 = vlaneseq }
 0x8bd   : > { %v1596_v57 = vpop.xlane.xlu1 %1595 }
 0x8be   : > { %3450 = vrsqrt.f32 %v1602_v55  ;;  %v1603_v59 = vadd.f32 1e-05, %v1599_v56  ;;  %v1600_v61 = vmul.f32 0.0078125, %v1596_v57  ;;  %v1670_v53 = vshrl.u32 %v1669_v52, 7  ;;  %v1667_v57 = vld [vmem:[%s4262_s0] sm:$0xf] }
 0x8c0   : > { %3452 = vrsqrt.f32 %v1603_v59  ;;  %v1604_v63 = vadd.f32 1e-05, %v1600_v61  ;;  %v1671_v55 = vsub.s32 0, %v1670_v53  ;;  %v1679_v56 = vsub.s32 2, %v1670_v53 }
 0x8c1   : > { %v1675_v59 = vsub.s32 1, %v1670_v53  ;;  %v1683_v61 = vsub.s32 3, %v1670_v53 }
 0x8c2   : > { %3454 = vrsqrt.f32 %v1604_v63  ;;  %v4545_v63 = vrot.slane %v1667_v57, %v1671_v55 }
 0x8c6   : > { %v3449_v0 = vpop.eup %3448 }
 0x8c7   : > { %v1609_v2 = vmul.f32 %v3449_v0, %v4408_v10  ;;  %v4547_v0 = vrot.slane %v1667_v57, %v1679_v56 }
 0x8c8   : > { %v3451_v3 = vpop.eup %3450 }
 0x8c9   : > { %v1610_v4 = vmul.f32 %v3451_v3, %v4411_v14  ;;  %v1619_v5 = vmul.f32 %v2837_v1, %v1609_v2 }
 0x8ca   : > { %v3453_v6 = vpop.eup %3452 }
 0x8cb   : > { %v1620_v8 = vmul.f32 %v2837_v1, %v1610_v4  ;;  %v1629_v11 = vadd.f32 %v2838_v7, %v1619_v5  ;;  %v1611_v15 = vmul.f32 %v3453_v6, %v4416_v18  ;;  %v4551_v4 = vrot.slane %v1667_v57, %v1683_v61 }
 0x8cc   : > { %v3455_v9 = vpop.eup %3454 }
 0x8cd   : > { %v1630_v12 = vadd.f32 %v2838_v7, %v1620_v8  ;;  %v1612_v10 = vmul.f32 %v3455_v9, %v4421_v21  ;;  %v1621_v17 = vmul.f32 %v2837_v1, %v1611_v15  ;;  %v3392_v21 = vld [vmem:[%s4268_s23 + $0x40] sm:$0xff]  }
 0x8ce   : > { %2975 = vmatprep.subr.bf16.mxu1 %v3392_v21 }
 0x8cf   : > { %v1633_v16 = vpack.c.bf16 %v1630_v12, %v1629_v11  ;;  %v1622_v14 = vmul.f32 %v2837_v1, %v1612_v10  ;;  %v1631_v13 = vadd.f32 %v2838_v7, %v1621_v17  ;;  %v4549_v1 = vrot.slane %v1667_v57, %v1675_v59 }
 0x8d1   : > { %1882 = vmatmul.mubr.bf16.vlgmr.msra.gmra.mrb[12].mxu1 %v1633_v16  ;;  %1935 = vmatmul.mubr.bf16.vlgmr.msra.gmra.mrb[16].mxu0 %v1633_v16  ;;  %v1632_v19 = vadd.f32 %v2838_v7, %v1622_v14 }
 0x8d2   : > { %1891 = vmatprep.mubr.bf16.mxu1 %v3822_v39  ;;  %1944 = vmatprep.mubr.bf16.mxu0 %v3822_v39  ;;  %v3396_v39 = vld [vmem:[%s4268_s23 + $0x48] sm:$0xff]  }
 0x8d3   : > { %v1634_v18 = vpack.c.bf16 %v1632_v19, %v1631_v13  ;;  %2976 = vmatpush3.bf16.msra.mxu1 %v3393_v22  ;;  %3004 = vmatpush3.bf16.msra.mxu0 %v4471_v23 }
 0x8d4   : > { %2977 = vmatprep.subr.bf16.mxu1 %v3396_v39  ;;  %3005 = vmatprep.subr.bf16.mxu0 %v4477_v25 }
 0x8d7   : > { %2978 = vmatpush3.bf16.msra.mxu1 %v3397_v24  ;;  %3006 = vmatpush3.bf16.msra.mxu0 %v4480_v26 }
 0x8d8   : > { %2979 = vmatprep.subr.bf16.mxu1 %v3400_v27  ;;  %3007 = vmatprep.subr.bf16.mxu0 %v4487_v29 }
 0x8d9   : > { %1892 = vmatmul.mubr.bf16.gmra.mrb[16].mxu1 %v1634_v18  ;;  %1945 = vmatmul.mubr.bf16.gmra.mrb[20].mxu0 %v1634_v18 }
 0x8db   : > { %2980 = vmatpush3.bf16.msra.mxu1 %v3401_v28  ;;  %3008 = vmatpush3.bf16.msra.mxu0 %v4491_v30 }
 0x8dc   : > { %2981 = vmatprep.subr.bf16.mxu1 %v3404_v31  ;;  %3009 = vmatprep.subr.bf16.mxu0 %v4497_v33 }
 0x8df   : > { %2982 = vmatpush3.bf16.msra.mxu1 %v3405_v32  ;;  %3010 = vmatpush3.bf16.msra.mxu0 %v4500_v34 }
 0x8e0   : > { %2983 = vmatprep.subr.bf16.mxu1 %v3408_v35  ;;  %3011 = vmatprep.subr.bf16.mxu0 %v4507_v37 }
 0x8e3   : > { %2984 = vmatpush3.bf16.msra.mxu1 %v3409_v36  ;;  %3012 = vmatpush3.bf16.msra.mxu0 %v4510_v38 }
 0x8e4   : > { %2985 = vmatprep.subr.bf16.mxu1 %v3412_v40  ;;  %3013 = vmatprep.subr.bf16.mxu0 %v4517_v42 }
 0x8e7   : > { %2986 = vmatpush3.bf16.msra.mxu1 %v3413_v41  ;;  %3014 = vmatpush3.bf16.msra.mxu0 %v4520_v43 }
 0x8e8   : > { %2987 = vmatprep.subr.bf16.mxu1 %v3416_v44  ;;  %3015 = vmatprep.subr.bf16.mxu0 %v4526_v46 }
 0x8eb   : > { %2988 = vmatpush3.bf16.msra.mxu1 %v3417_v45  ;;  %3016 = vmatpush3.bf16.msra.mxu0 %v4530_v47 }
 0x8ec   : > { %2989 = vmatprep.subr.bf16.mxu1 %v3420_v48  ;;  %3017 = vmatprep.subr.bf16.mxu0 %v4535_v49 }
 0x8ef   : > { %2990 = vmatpush3.bf16.msra.mxu1 %v3421_v50  ;;  %3018 = vmatpush3.bf16.msra.mxu0 %v4540_v51 }
 0x8f0   : > { %3181 = vmatprep.subr.bf16.mxu1 %v3394_v20 }
 0x9a4   : > { %v1883_v2 = vpop.f32.mrb[12].mxu1  ;;  %v1936_v3 = vpop.f32.mrb[16].mxu0 }
 0x9a5   : > { %v1884_v5 = vadd.f32 %v1883_v2, %v4545_v63  ;;  %v1937_v6 = vadd.f32 %v1936_v3, %v4547_v0  ;;  %v1885_v7 = vpop.f32.mrb[13].mxu1  ;;  %v1938_v8 = vpop.f32.mrb[17].mxu0 }
 0x9a6   : > { %v4556_v9 = vadd.f32 %v1885_v7, %v4549_v1  ;;  %v1887_v11 = vpop.f32.mrb[14].mxu1  ;;  %v1940_v12 = vpop.f32.mrb[18].mxu0  ;;  %v4560_v14 = vadd.f32 %v1938_v8, %v4551_v4 }
 0x9a7   : > { %v1971_v15 = vmul.f32 0.044715, %v1884_v5  ;;  %v1973_v10 = vmul.f32 0.044715, %v1937_v6  ;;  %v4563_v17 = vadd.f32 %v1887_v11, %v4545_v63  ;;  %v4566_v19 = vadd.f32 %v1940_v12, %v4547_v0  ;;  %v1889_v13 = vpop.f32.mrb[15].mxu1  ;;  %v1942_v18 = vpop.f32.mrb[19].mxu0 }
 0x9a8   : > { %v1972_v16 = vmul.f32 0.044715, %v4556_v9  ;;  %v4569_v20 = vadd.f32 %v1889_v13, %v4549_v1  ;;  %v4572_v24 = vmul.f32 0.5, %v1884_v5  ;;  %v1974_v35 = vmul.f32 0.044715, %v4560_v14 }
 0x9a9   : > { %v1987_v21 = vmul.f32 %v1971_v15, %v1884_v5  ;;  %v1989_v22 = vmul.f32 %v1973_v10, %v1937_v6  ;;  %v1975_v39 = vmul.f32 0.044715, %v4563_v17  ;;  %v1977_v31 = vmul.f32 0.044715, %v4566_v19 }
 0x9aa   : > { %v1988_v32 = vmul.f32 %v1972_v16, %v4556_v9  ;;  %v4579_v40 = vadd.f32 %v1942_v18, %v4551_v4  ;;  %v1976_v52 = vmul.f32 0.044715, %v4569_v20  ;;  %v4583_v56 = vmul.f32 0.5, %v1937_v6 }
 0x9ab   : > { %v2003_v27 = vmul.f32 %v1987_v21, %v1884_v5  ;;  %v2005_v28 = vmul.f32 %v1989_v22, %v1937_v6  ;;  %v1991_v36 = vmul.f32 %v1975_v39, %v4563_v17  ;;  %v1993_v50 = vmul.f32 %v1977_v31, %v4566_v19 }
 0x9ac   : > { %v1893_v41 = vpop.f32.mrb[16].mxu1  ;;  %v1946_v44 = vpop.f32.mrb[20].mxu0  ;;  %v2004_v15 = vmul.f32 %v1988_v32, %v4556_v9  ;;  %v1978_v16 = vmul.f32 0.044715, %v4579_v40  ;;  %v1992_v18 = vmul.f32 %v1976_v52, %v4569_v20 }
 0x9ad   : > { %v2019_v45 = vadd.f32 %v2003_v27, %v1884_v5  ;;  %v2021_v48 = vadd.f32 %v2005_v28, %v1937_v6  ;;  %v1895_v53 = vpop.f32.mrb[17].mxu1  ;;  %v1948_v55 = vpop.f32.mrb[21].mxu0  ;;  %v2007_v57 = vmul.f32 %v1991_v36, %v4563_v17  ;;  %v4587_v59 = vadd.f32 %v1893_v41, %v4545_v63 }
 0x9ae   : > { %v4590_v61 = vadd.f32 %v1946_v44, %v4547_v0  ;;  %v1897_v2 = vpop.f32.mrb[18].mxu1  ;;  %v1950_v3 = vpop.f32.mrb[22].mxu0  ;;  %v2009_v8 = vmul.f32 %v1993_v50, %v4566_v19  ;;  %v1990_v6 = vmul.f32 %v1974_v35, %v4560_v14  ;;  %v4602_v27 = vadd.f32 %v1895_v53, %v4549_v1 }
 0x9af   : > { %v2035_v5 = vmul.f32 0.7978846, %v2019_v45  ;;  %v2037_v7 = vmul.f32 0.7978846, %v2021_v48  ;;  %v1899_v11 = vpop.f32.mrb[19].mxu1  ;;  %v1952_v12 = vpop.f32.mrb[23].mxu0  ;;  %v2023_v10 = vadd.f32 %v2007_v57, %v4563_v17  ;;  %v4606_v32 = vadd.f32 %v1948_v55, %v4551_v4 }
 0x9b0   : > { %v2025_v13 = vadd.f32 %v2009_v8, %v4566_v19  ;;  %v1981_v21 = vmul.f32 0.044715, %v4590_v61  ;;  %v1979_v39 = vmul.f32 0.044715, %v4587_v59  ;;  %v4609_v35 = vadd.f32 %v1897_v2, %v4545_v63 }
 0x9b1   : > { %3456 = vtanh.f32 %v2035_v5  ;;  %v2039_v22 = vmul.f32 0.7978846, %v2023_v10  ;;  %v1994_v36 = vmul.f32 %v1978_v16, %v4579_v40  ;;  %v1980_v41 = vmul.f32 0.044715, %v4602_v27 }
 0x9b2   : > { %3458 = vtanh.f32 %v2037_v7  ;;  %v2041_v28 = vmul.f32 0.7978846, %v2025_v13  ;;  %v1997_v31 = vmul.f32 %v1981_v21, %v4590_v61  ;;  %v4614_v44 = vadd.f32 %v1950_v3, %v4547_v0 }
 0x9b3   : > { %3460 = vtanh.f32 %v2039_v22  ;;  %v2008_v45 = vmul.f32 %v1992_v18, %v4569_v20  ;;  %v1982_v50 = vmul.f32 0.044715, %v4606_v32  ;;  %v1995_v52 = vmul.f32 %v1979_v39, %v4587_v59 }
 0x9b4   : > { %3462 = vtanh.f32 %v2041_v28  ;;  %v2013_v48 = vmul.f32 %v1997_v31, %v4590_v61  ;;  %v1983_v63 = vmul.f32 0.044715, %v4609_v35  ;;  %v1985_v53 = vmul.f32 0.044715, %v4614_v44 }
 0x9b5   : > { %v4623_v55 = vadd.f32 %v1899_v11, %v4549_v1  ;;  %v1996_v0 = vmul.f32 %v1980_v41, %v4602_v27  ;;  %v1998_v2 = vmul.f32 %v1982_v50, %v4606_v32  ;;  %v4629_v3 = vadd.f32 %v1952_v12, %v4551_v4 }
 0x9b6   : > { %v2029_v57 = vadd.f32 %v2013_v48, %v4590_v61  ;;  %v1959_v5 = vmul.f32 0.5, %v4563_v17  ;;  %v1961_v7 = vmul.f32 0.5, %v4566_v19  ;;  %v2001_v8 = vmul.f32 %v1985_v53, %v4614_v44 }
 0x9b7   : > { %v1984_v10 = vmul.f32 0.044715, %v4623_v55  ;;  %v2006_v1 = vmul.f32 %v1990_v6, %v4560_v14  ;;  %v2010_v11 = vmul.f32 %v1994_v36, %v4579_v40  ;;  %v1986_v13 = vmul.f32 0.044715, %v4629_v3 }
 0x9b8   : > { %v2045_v16 = vmul.f32 0.7978846, %v2029_v57  ;;  %v2011_v18 = vmul.f32 %v1995_v52, %v4587_v59  ;;  %v2017_v4 = vmul.f32 %v2001_v8, %v4614_v44  ;;  %v2020_v17 = vadd.f32 %v2004_v15, %v4556_v9 }
 0x9b9   : > { %v2000_v12 = vmul.f32 %v1984_v10, %v4623_v55  ;;  %v2012_v21 = vmul.f32 %v1996_v0, %v4602_v27  ;;  %v2014_v22 = vmul.f32 %v1998_v2, %v4606_v32  ;;  %v1999_v6 = vmul.f32 %v1983_v63, %v4609_v35 }
 0x9ba   : > { %v2024_v39 = vadd.f32 %v2008_v45, %v4569_v20  ;;  %3464 = vtanh.f32 %v2045_v16  ;;  %v2033_v31 = vadd.f32 %v2017_v4, %v4614_v44  ;;  %v2002_v36 = vmul.f32 %v1986_v13, %v4629_v3 }
 0x9bb   : > { %v3457_v19 = vpop.eup %3456  ;;  %v2036_v41 = vmul.f32 0.7978846, %v2020_v17  ;;  %v2016_v48 = vmul.f32 %v2000_v12, %v4623_v55  ;;  %v2022_v15 = vadd.f32 %v2006_v1, %v4560_v14  ;;  %v2026_v52 = vadd.f32 %v2010_v11, %v4579_v40 }
 0x9bc   : > { %v3459_v28 = vpop.eup %3458  ;;  %v2040_v50 = vmul.f32 0.7978846, %v2024_v39  ;;  %v2049_v57 = vmul.f32 0.7978846, %v2033_v31  ;;  %v2067_v63 = vadd.f32 1.0, %v3457_v19  ;;  %v2015_v16 = vmul.f32 %v1999_v6, %v4609_v35 }
 0x9bd   : > { %v3461_v53 = vpop.eup %3460  ;;  %3466 = vtanh.f32 %v2036_v41  ;;  %v2069_v0 = vadd.f32 1.0, %v3459_v28  ;;  %v2038_v2 = vmul.f32 0.7978846, %v2022_v15  ;;  %v2042_v8 = vmul.f32 0.7978846, %v2026_v52 }
 0x9be   : > { %v3463_v45 = vpop.eup %3462  ;;  %3468 = vtanh.f32 %v2040_v50  ;;  %v2071_v10 = vadd.f32 1.0, %v3461_v53  ;;  %v2018_v13 = vmul.f32 %v2002_v36, %v4629_v3  ;;  %v2083_v1 = vmul.f32 %v2067_v63, %v4572_v24 }
 0x9bf   : > { %3470 = vtanh.f32 %v2049_v57  ;;  %v2073_v4 = vadd.f32 1.0, %v3463_v45  ;;  %v4655_v12 = vmul.f32 %v2069_v0, %v4583_v56  ;;  %v2028_v19 = vadd.f32 %v2012_v21, %v4602_v27 }
 0x9c0   : > { %3472 = vtanh.f32 %v2038_v2  ;;  %v2087_v11 = vmul.f32 %v2071_v10, %v1959_v5  ;;  %v2032_v39 = vadd.f32 %v2016_v48, %v4623_v55  ;;  %v2027_v6 = vadd.f32 %v2011_v18, %v4587_v59 }
 0x9c1   : > { %3474 = vtanh.f32 %v2042_v8  ;;  %v4657_v17 = vmul.f32 %v2073_v4, %v1961_v7  ;;  %v2044_v36 = vmul.f32 0.7978846, %v2028_v19  ;;  %v2031_v24 = vadd.f32 %v2015_v16, %v4609_v35 }
 0x9c2   : > { %v2099_v28 = vpack.c.bf16 %v2087_v11, %v2083_v1  ;;  %v2048_v41 = vmul.f32 0.7978846, %v2032_v39  ;;  %v2043_v5 = vmul.f32 0.7978846, %v2027_v6  ;;  %v2030_v56 = vadd.f32 %v2014_v22, %v4606_v32 }
 0x9c3   : > { %v2101_v31 = vpack.c.bf16 %v4657_v17, %v4655_v12  ;;  %3476 = vtanh.f32 %v2044_v36  ;;  %v2047_v7 = vmul.f32 0.7978846, %v2031_v24  ;;  %v2034_v21 = vadd.f32 %v2018_v13, %v4629_v3 }
 0x9c4   : > { %v3465_v50 = vpop.eup %3464  ;;  %3478 = vtanh.f32 %v2048_v41  ;;  %v2046_v48 = vmul.f32 0.7978846, %v2030_v56  ;;  %v1956_v0 = vmul.f32 0.5, %v4556_v9  ;;  %v1960_v45 = vmul.f32 0.5, %v4569_v20 }
 0x9c5   : > { %3480 = vtanh.f32 %v2043_v5  ;;  %v2050_v18 = vmul.f32 0.7978846, %v2034_v21  ;;  %v2077_v57 = vadd.f32 1.0, %v3465_v50  ;;  %v1965_v8 = vmul.f32 0.5, %v4590_v61 }
 0x9c6   : > { %3482 = vtanh.f32 %v2047_v7  ;;  %v1969_v10 = vmul.f32 0.5, %v4614_v44  ;;  %v1958_v11 = vmul.f32 0.5, %v4560_v14  ;;  %v1962_v17 = vmul.f32 0.5, %v4579_v40 }
 0x9c7   : > { %v3467_v15 = vpop.eup %3466  ;;  %3484 = vtanh.f32 %v2046_v48  ;;  %v2093_v19 = vmul.f32 %v2077_v57, %v1965_v8  ;;  %v1964_v14 = vmul.f32 0.5, %v4602_v27  ;;  %v1968_v40 = vmul.f32 0.5, %v4623_v55 }
 0x9c8   : > { %v3469_v52 = vpop.eup %3468  ;;  %v2068_v53 = vadd.f32 1.0, %v3467_v15  ;;  %3486 = vtanh.f32 %v2050_v18  ;;  %v1963_v21 = vmul.f32 0.5, %v4587_v59  ;;  %v1966_v27 = vmul.f32 0.5, %v4606_v32 }
 0x9c9   : > { %v3471_v63 = vpop.eup %3470  ;;  %v2072_v22 = vadd.f32 1.0, %v3469_v52  ;;  %v1967_v52 = vmul.f32 0.5, %v4609_v35  ;;  %v1970_v55 = vmul.f32 0.5, %v4629_v3 }
 0x9ca   : > { %v3473_v2 = vpop.eup %3472  ;;  %v2081_v16 = vadd.f32 1.0, %v3471_v63  ;;  %v2084_v4 = vmul.f32 %v2068_v53, %v1956_v0 }
 0x9cb   : > { %v3475_v13 = vpop.eup %3474  ;;  %v2088_v1 = vmul.f32 %v2072_v22, %v1960_v45  ;;  %v2070_v12 = vadd.f32 1.0, %v3473_v2 }
 0x9cc   : > { %v2074_v9 = vadd.f32 1.0, %v3475_v13  ;;  %v2097_v20 = vmul.f32 %v2081_v16, %v1969_v10 }
 0x9cd   : > { %v2100_v39 = vpack.c.bf16 %v2088_v1, %v2084_v4  ;;  %v2086_v6 = vmul.f32 %v2070_v12, %v1958_v11  ;;  %v3477_v61 = vpop.eup %3476 }
 0x9ce   : > { %v2090_v36 = vmul.f32 %v2074_v9, %v1962_v17  ;;  %v2105_v41 = vpack.c.bf16 %v2097_v20, %v2093_v19  ;;  %v3479_v44 = vpop.eup %3478  ;;  %v2076_v5 = vadd.f32 1.0, %v3477_v61 }
 0x9cf   : > { %2395 = vmatprep.mubr.bf16.mxu1 %v2100_v39  ;;  %v3481_v56 = vpop.eup %3480  ;;  %v2080_v50 = vadd.f32 1.0, %v3479_v44 }
 0x9d0   : > { %v2102_v24 = vpack.c.bf16 %v2090_v36, %v2086_v6  ;;  %2396 = vmatmul.mubr.bf16.vlgmr.msra.gmra.mrb[20].mxu1 %v2099_v28  ;;  %v3483_v7 = vpop.eup %3482  ;;  %v2075_v48 = vadd.f32 1.0, %v3481_v56  ;;  %v2092_v18 = vmul.f32 %v2076_v5, %v1964_v14 }
 0x9d1   : > { %3189 = vmatpush3.bf16.msra.mxu1 %v4471_v23  ;;  %v3485_v15 = vpop.eup %3484  ;;  %v2096_v28 = vmul.f32 %v2080_v50, %v1968_v40  ;;  %v2079_v53 = vadd.f32 1.0, %v3483_v7 }
 0x9d2   : > { %2444 = vmatprep.mubr.bf16.mxu0 %v2102_v24  ;;  %3182 = vmatprep.subr.bf16.mxu1 %v4477_v25  ;;  %v3487_v23 = vpop.eup %3486  ;;  %v2078_v57 = vadd.f32 1.0, %v3485_v15  ;;  %v2091_v25 = vmul.f32 %v2075_v48, %v1963_v21 }
 0x9d3   : > { %2445 = vmatmul.mubr.bf16.vlgmr.msra.gmra.mrb[24].mxu0 %v2101_v31  ;;  %v2104_v63 = vpack.c.bf16 %v2096_v28, %v2092_v18  ;;  %v2095_v0 = vmul.f32 %v2079_v53, %v1967_v52  ;;  %v2082_v59 = vadd.f32 1.0, %v3487_v23 }
 0x9d4   : > { %v2094_v45 = vmul.f32 %v2078_v57, %v1966_v27 }
 0x9d5   : > { %3190 = vmatpush3.bf16.msra.mxu1 %v4480_v26  ;;  %2403 = vmatprep.mubr.bf16.mxu1 %v2104_v63  ;;  %v2103_v31 = vpack.c.bf16 %v2095_v0, %v2091_v25  ;;  %v2098_v22 = vmul.f32 %v2082_v59, %v1970_v55 }
 0x9d6   : > { %3183 = vmatprep.subr.bf16.mxu1 %v4487_v29 }
 0x9d7   : > { %v2106_v35 = vpack.c.bf16 %v2098_v22, %v2094_v45 }
 0x9d8   : > { %2404 = vmatmul.mubr.bf16.gmra.mrb[24].mxu1 %v2103_v31 }
 0x9d9   : > { %3191 = vmatpush3.bf16.msra.mxu1 %v4491_v30  ;;  %2452 = vmatprep.mubr.bf16.mxu1 %v2106_v35 }
 0x9da   : > { %3184 = vmatprep.subr.bf16.mxu1 %v4497_v33 }
 0x9dd   : > { %3192 = vmatpush3.bf16.msra.mxu1 %v4500_v34 }
 0x9de   : > { %3185 = vmatprep.subr.bf16.mxu1 %v4507_v37 }
 0x9e1   : > { %3193 = vmatpush3.bf16.msra.mxu1 %v4510_v38 }
 0x9e2   : > { %3186 = vmatprep.subr.bf16.mxu1 %v4517_v42 }
 0x9e5   : > { %3194 = vmatpush3.bf16.msra.mxu1 %v4520_v43 }
 0x9e6   : > { %3187 = vmatprep.subr.bf16.mxu1 %v4526_v46 }
 0x9e9   : > { %3195 = vmatpush3.bf16.msra.mxu1 %v4530_v47  ;;  %v2903_v47 = vld [vmem:[%s787_s25] ss:$0 sm:$0xff] }
 0x9ea   : > { %3188 = vmatprep.subr.bf16.mxu1 %v4535_v49 }
 0x9ed   : > { %3196 = vmatpush3.bf16.msra.mxu1 %v4540_v51 }
 0x9f0   : > { %2453 = vmatmul.mubr.bf16.vlgmr.msra.gmra.mrb[28].mxu1 %v2105_v41 }
 0xaa3   : > { %v2991_v26 = vpop.f32.mrb[20].mxu1 }
 0xaa4   : > { %v2992_v29 = vpop.f32.mrb[21].mxu1 }
 0xaa5   : > { %v2993_v30 = vadd.f32 %v2992_v29, %v2991_v26  ;;  %v2994_v33 = vpop.f32.mrb[22].mxu1 }
 0xaa6   : > { %v3019_v34 = vpop.f32.mrb[24].mxu0  ;;  %v2995_v37 = vpop.f32.mrb[23].mxu1 }
 0xaa7   : > { %v3020_v38 = vpop.f32.mrb[25].mxu0  ;;  %v2996_v42 = vadd.f32 %v2995_v37, %v2994_v33 }
 0xaa8   : > { %v3021_v32 = vadd.f32 %v3020_v38, %v3019_v34  ;;  %v3022_v43 = vpop.f32.mrb[26].mxu0 }
 0xaa9   : > { %v3023_v3 = vpop.f32.mrb[27].mxu0 }
 0xaaa   : > { %v2447_v46 = vadd.f32 %v3021_v32, %v2993_v30  ;;  %v3024_v2 = vadd.f32 %v3023_v3, %v3022_v43 }
 0xaab   : > { %v2997_v8 = vpop.f32.mrb[24].mxu1 }
 0xaac   : > { %v2461_v49 = vadd.f32 %v2447_v46, %v4387_v54  ;;  %v2450_v51 = vadd.f32 %v3024_v2, %v2996_v42  ;;  %v2998_v10 = vpop.f32.mrb[25].mxu1 }
 0xaad   : > { %v2999_v4 = vadd.f32 %v2998_v10, %v2997_v8  ;;  %v3000_v1 = vpop.f32.mrb[26].mxu1 }
 0xaae   : > { %v2472_v16 = vadd.f32 %v2903_v47, %v2461_v49  ;;  %v2462_v13 = vadd.f32 %v2450_v51, %v4389_v58  ;;  %v3001_v11 = vpop.f32.mrb[27].mxu1 }
 0xaaf   : > { %v3002_v17 = vadd.f32 %v3001_v11, %v3000_v1 }
 0xab0   : > { %v2473_v12 = vadd.f32 %v2903_v47, %v2462_v13  ;;  %2480 = vst [vmem:[#allocation14] sm:$0xff] (!%p2904_p12), %v2472_v16 }
 0xab2   : > { %2481 = vst [vmem:[#allocation14 + $0x8] sm:$0xff] (!%p2904_p12), %v2473_v12 }
 0xac3   : > { %v3025_v9 = vpop.f32.mrb[28].mxu1 }
 0xac4   : > { %v3026_v19 = vpop.f32.mrb[29].mxu1 }
 0xac5   : > { %v3027_v20 = vadd.f32 %v3026_v19, %v3025_v9  ;;  %v3028_v39 = vpop.f32.mrb[30].mxu1 }
 0xac6   : > { %v3029_v6 = vpop.f32.mrb[31].mxu1 }
 0xac7   : > { %v2455_v36 = vadd.f32 %v3027_v20, %v2999_v4  ;;  %v3030_v41 = vadd.f32 %v3029_v6, %v3028_v39  ;;  %2479 = sbr.rel (%p2904_p12) target bundleno = 2768 (0xad0), region = 125 }
 0xac9   : > { %v2463_v54 = vadd.f32 %v2455_v36, %v4392_v60  ;;  %v2458_v61 = vadd.f32 %v3030_v41, %v3002_v17 }
 0xacb   : > { %v2474_v44 = vadd.f32 %v2903_v47, %v2463_v54  ;;  %v2464_v24 = vadd.f32 %v2458_v61, %v4395_v62 }
 0xacd   : > { %v2475_v5 = vadd.f32 %v2903_v47, %v2464_v24  ;;  %2482 = vst [vmem:[#allocation14 + $0x10] sm:$0xff] (!%p2904_p12), %v2474_v44 }
 0xacf   : > { %2483 = vst [vmem:[#allocation14 + $0x18] sm:$0xff] %v2475_v5 }
 0xad0 PF: > { %s4864_s25 = sld [smem:[#allocation28_spill]] }
 0xad6   : > { %p2905_p1 = scmp.ne.s32.totalorder %s4864_s25, 1 }
 0xad7   : > { %2490 = vadd.xlane.f32.xlu0 (!%p2905_p1), %v2472_v16  ;;  %2494 = vadd.xlane.f32.xlu1 (!%p2905_p1), %v2474_v44  ;;  %s4865_s17 = sld [smem:[#allocation44_spill]] (!%p2905_p1)  ;;  %s4866_s11 = sld [smem:[#allocation45_spill]] (!%p2905_p1) }
 0xad8   : > { %2487 = sbr.rel (%p2905_p1) target bundleno = 3095 (0xc17), region = 129 }
 0xadb   : > { %2492 = vadd.xlane.f32.xlu0 (!%p2905_p1), %v2473_v12  ;;  %2496 = vadd.xlane.f32.xlu1 (!%p2905_p1), %v2475_v5 }
 0xadd   : > { %v2906_v30 = vld [vmem:[%s4865_s17] ss:$0 sm:$0xff] (!%p2905_p1) }
 0xade   : > { %v2907_v34 = vld [vmem:[%s4866_s11] ss:$0 sm:$0xff] (!%p2905_p1) }
 0xb64   : > { %v2491_v58 = vpop.xlane.xlu0 %2490  ;;  %v2495_v60 = vpop.xlane.xlu1 %2494 }
 0xb65   : > { %v2498_v62 = vmul.f32 0.0078125, %v2491_v58  ;;  %v2500_v56 = vmul.f32 0.0078125, %v2495_v60 }
 0xb67   : > { %v2502_v14 = vsub.f32 %v2472_v16, %v2498_v62  ;;  %v2504_v40 = vsub.f32 %v2474_v44, %v2500_v56 }
 0xb68   : > { %v2493_v50 = vpop.xlane.xlu0 %2492  ;;  %v2497_v7 = vpop.xlane.xlu1 %2496 }
 0xb69   : > { %v2499_v21 = vmul.f32 0.0078125, %v2493_v50  ;;  %v2506_v48 = vmul.f32 %v2502_v14, %v2502_v14  ;;  %v2501_v15 = vmul.f32 0.0078125, %v2497_v7  ;;  %v2508_v52 = vmul.f32 %v2504_v40, %v2504_v40 }
 0xb6b   : > { %v2503_v18 = vsub.f32 %v2473_v12, %v2499_v21  ;;  %2510 = vadd.xlane.f32.xlu0 %v2506_v48  ;;  %v2505_v28 = vsub.f32 %v2475_v5, %v2501_v15 }
 0xb6d   : > { %v2507_v53 = vmul.f32 %v2503_v18, %v2503_v18  ;;  %v2509_v23 = vmul.f32 %v2505_v28, %v2505_v28 }
 0xb6f   : > { %2514 = vadd.xlane.f32.xlu0 %v2508_v52  ;;  %2512 = vadd.xlane.f32.xlu1 %v2507_v53 }
 0xb73   : > { %2516 = vadd.xlane.f32.xlu1 %v2509_v23 }
 0xbf8   : > { %v2511_v27 = vpop.xlane.xlu0 %2510 }
 0xbf9   : > { %v2518_v55 = vmul.f32 0.0078125, %v2511_v27 }
 0xbfb   : > { %v2522_v57 = vadd.f32 1e-05, %v2518_v55 }
 0xbfc   : > { %v2513_v63 = vpop.xlane.xlu1 %2512  ;;  %v2515_v25 = vpop.xlane.xlu0 %2514 }
 0xbfd   : > { %3492 = vrsqrt.f32 %v2522_v57  ;;  %v2519_v0 = vmul.f32 0.0078125, %v2513_v63  ;;  %v2520_v59 = vmul.f32 0.0078125, %v2515_v25 }
 0xbff   : > { %v2523_v31 = vadd.f32 1e-05, %v2519_v0  ;;  %v2524_v45 = vadd.f32 1e-05, %v2520_v59 }
 0xc00   : > { %v2517_v22 = vpop.xlane.xlu1 %2516 }
 0xc01   : > { %3494 = vrsqrt.f32 %v2523_v31  ;;  %v2521_v35 = vmul.f32 0.0078125, %v2517_v22 }
 0xc02   : > { %3496 = vrsqrt.f32 %v2524_v45 }
 0xc03   : > { %v2525_v26 = vadd.f32 1e-05, %v2521_v35 }
 0xc05   : > { %3498 = vrsqrt.f32 %v2525_v26 }
 0xc07   : > { %v3493_v29 = vpop.eup %3492 }
 0xc08   : > { %v2530_v33 = vmul.f32 %v3493_v29, %v2502_v14 }
 0xc0a   : > { %v2540_v37 = vmul.f32 %v2906_v30, %v2530_v33 }
 0xc0b   : > { %v3495_v38 = vpop.eup %3494 }
 0xc0c   : > { %v3497_v42 = vpop.eup %3496  ;;  %v2550_v32 = vadd.f32 %v2907_v34, %v2540_v37  ;;  %v2531_v43 = vmul.f32 %v3495_v38, %v2503_v18 }
 0xc0d   : > { %v2532_v3 = vmul.f32 %v3497_v42, %v2504_v40 }
 0xc0e   : > { %2554 = vst [vmem:[#allocation14] sm:$0xff] %v2550_v32  ;;  %v2541_v46 = vmul.f32 %v2906_v30, %v2531_v43 }
 0xc0f   : > { %v3499_v2 = vpop.eup %3498  ;;  %v2542_v47 = vmul.f32 %v2906_v30, %v2532_v3 }
 0xc10   : > { %v2551_v49 = vadd.f32 %v2907_v34, %v2541_v46  ;;  %v2533_v51 = vmul.f32 %v3499_v2, %v2505_v28 }
 0xc11   : > { %v2552_v8 = vadd.f32 %v2907_v34, %v2542_v47 }
 0xc12   : > { %2555 = vst [vmem:[#allocation14 + $0x8] sm:$0xff] %v2551_v49  ;;  %v2543_v10 = vmul.f32 %v2906_v30, %v2533_v51 }
 0xc13   : > { %2556 = vst [vmem:[#allocation14 + $0x10] sm:$0xff] %v2552_v8 }
 0xc14   : > { %v2553_v16 = vadd.f32 %v2907_v34, %v2543_v10 }
 0xc16   : > { %2557 = vst [vmem:[#allocation14 + $0x18] sm:$0xff] %v2553_v16 }
 0xc17 PF: > { %s3823_s14 = smov [#allocation14]  }
 0xc18   : > { %s2564_s21 = sshll.u32 %s3823_s14, 4  ;;  %s2565_s21 = int_to_ptr.vmem [resolvable:$true] %s2564_s21 }
 0xc19   : > { %s3726_s29 = scalar_lea.vmem %s2565_s21, 512  ;;  %p3733_p10 = scmp.lt.s32.totalorder %s2565_s21, %s2565_s21 }
 0xc1a   : > { %p3727_p6 = scmp.ne.s32.totalorder %s2565_s21, %s3726_s29  ;;  %p3734_p4 = scmp.lt.s32.totalorder %s3726_s29, %s3726_s29 }
 0xc1c   : > { %p3728_p8 = pnand %p3727_p6, %p2904_p12  ;;  %p3735_p0 = por %p3734_p4, %p3733_p10 }
 0xc1e   : > { %p3729_p7 = pneg %p3728_p8 }
 0xc20   : > { %p3736_p5 = pnand %p3735_p0, %p3729_p7 }
 0xc22   : > { %3739 = shalt.err (!%p3736_p5)
}
 0xc23   : > { %s4868_s30 = sld [smem:[#allocation46_spill]] }
 0xc29   : > { %s3740_s9 = scalar_lea.hbm %s4868_s30, 512 }
 0xc2a   : > { %p3741_p9 = scmp.ne.s32.totalorder %s4868_s30, %s3740_s9  ;;  %p3746_p11 = scmp.lt.u32.totalorder %s3740_s9, %s4868_s30 }
 0xc2c   : > { %p3742_p2 = pnand %p3741_p9, %p2904_p12 }
 0xc2e   : > { %p3743_p3 = pneg %p3742_p2 }
 0xc30   : > { %p3748_p13 = pnand %p3746_p11, %p3743_p3 }
 0xc32   : > { %3751 = shalt.err (!%p3748_p13)
}
 0xc33   : > { %s3824_s20 = smov 128   ;;  %s3825_s19 = smov 8  }
 0xc34   : > { %3221 = dma.vmem_to_hbm [thread:$0]  (%p2904_p12), %s2565_s21, 512, %s4868_s30, [#allocation4], %s3824_s20, %s3824_s20, %s3825_s19  }
 0xc35   : > { %3787 = dma.done.wait (%p2904_p12), [#allocation4], 512  }
 0xc36   : > { %3789 = vsyncadd (%p2904_p12), [#allocation4], 4294966784 }
 0xc37 PF: > { %s4869_s27 = sld [smem:[#allocation29_spill]]  ;;  %s4870_s24 = sld [smem:[#allocation26_spill]] }
 0xc38   : > { %s4871_s25 = sld [smem:[#allocation27_spill]]  ;;  %s4872_s26 = sld [smem:[#allocation30_spill]] }
 0xc3d   : > { %p33_p1 = scmp.ge.s32.totalorder %s4869_s27, 4  }
 0xc3f   :  { %35 = sbr.rel (!%p33_p1) target bundleno = 24 (0x18), region = 207 }
 0xc46   :  { %2580 = vsyncpa [#allocation3], 1 }
 0xc47   :  { %2582 = vsyncpa [#allocation3 + $0x1], 1 }
 0xc48   :  { %2583 = vsyncpa [#allocation6], 1 }
 0xc49   :  { %2584 = vsyncpa [#allocation9], 1 }
 0xc4a   :  { %2586 = vsyncpa [#allocation9 + $0x1], 1 }
 0xc4b   :  { %2587 = vsyncpa [#allocation12], 1 }
 0xc4c   :  { %2589 = vsyncpa [#allocation12 + $0x1], 1 }
 0xc4d   :  { %2590 = vsyncpa [#allocation4], 1 }
 0xc4e   :  { %2592 = vsyncpa [#allocation4 + $0x1], 1 }

</bundles_post_ra>
